<compile_context>
chip_gen: v7x
topology: tpu7x:2x2x1
jax: 0.10.0
libtpu: 0.0.40
codegen_flags: <defaults>
</compile_context>

<pallas_src>
import jax
import jax.numpy as jnp
from jax import lax
from jax.experimental import pallas as pl
from jax.experimental.pallas import tpu as pltpu

HIDDEN = 50


def _round_up(n, m):
    return ((n + m - 1) // m) * m


def _pad_gates(w, h, hp):
    """Zero-pad the gate-stacked leading dim (4*h, ...) -> (4*hp, ...) per gate."""
    parts = w.reshape(4, h, *w.shape[1:])
    pad_width = [(0, 0), (0, hp - h)] + [(0, 0)] * (w.ndim - 1)
    parts = jnp.pad(parts, pad_width)
    return parts.reshape(4 * hp, *w.shape[1:])


def lstm_kernel(x_ref, w_ih_ref, b_ref, w_hh_ref, w_out_ref, b_out_ref,
                y_ref, h_ref, c_ref):
    """LSTM (PyTorch gate order i,f,g,o) fused with Linear(H, 1).

    Grid: (batch_tile, time_chunk); time_chunk is the sequential carry axis.

    x_ref:     (TILE_B, Tc)   input chunk, batch-major (time on lanes)
    w_ih_ref:  (1, 4Hp)       gate-padded weight_ih_l0 (input_size == 1)
    b_ref:     (1, 4Hp)       gate-padded bias_ih_l0 + bias_hh_l0
    w_hh_ref:  (Hp, 4Hp)      padded, transposed weight_hh_l0
    w_out_ref: (1, Hp)        padded linear weight
    b_out_ref: (1, 1)         linear bias (SMEM scalar)
    y_ref:     (TILE_B, Tc)   output chunk
    h_ref:     (TILE_B, Hp)   VMEM scratch: hidden state carried across chunks
    c_ref:     (TILE_B, Hp)   VMEM scratch: cell state carried across chunks
    """
    Tc = x_ref.shape[1]
    Hp = w_hh_ref.shape[0]

    # New sequence (first time chunk of this batch tile): reset the carry.
    @pl.when(pl.program_id(1) == 0)
    def _():
        h_ref[...] = jnp.zeros_like(h_ref)
        c_ref[...] = jnp.zeros_like(c_ref)

    # Loop-resident operands (loaded once per chunk).
    w_ih = w_ih_ref[...]                     # (1, 4Hp)
    b = b_ref[...]                           # (1, 4Hp)
    w_hh = w_hh_ref[...]                     # (Hp, 4Hp)
    w_out = w_out_ref[...]                   # (1, Hp)
    b_out = b_out_ref[0, 0]                  # scalar (SMEM)

    h = h_ref[...]
    c = c_ref[...]

    # Tc is a small static constant (<= 128) -> Python-unrolled loop with
    # all-static indexing and full scheduler visibility.
    # TODO(synk): for chunk sizes beyond ~32 steps, switch to
    #   lax.fori_loop(..., unroll=4..8) with pl.ds indexing to bound code size.
    # TODO(synk): keep W_hh resident in the MXU weight registers across the
    #   recurrence via pltpu.matmul_push_rhs / matmul_acc_lhs / matmul_pop once
    #   that explicit path is validated for an (Hp, 4Hp) = (128, 512) RHS
    #   (spans two 256x256 staging registers on v6e/v7x).
    for t in range(Tc):
        x_t = x_ref[:, t:t + 1]                              # (TILE_B, 1)
        # Input projection (VPU broadcast FMA, K=1) + recurrent matmul (MXU).
        gates = x_t * w_ih + b + jnp.dot(
            h, w_hh, preferred_element_type=jnp.float32)      # (TILE_B, 4Hp)
        i_g = jax.nn.sigmoid(gates[:, 0 * Hp:1 * Hp])
        f_g = jax.nn.sigmoid(gates[:, 1 * Hp:2 * Hp])
        g_g = jnp.tanh(gates[:, 2 * Hp:3 * Hp])
        o_g = jax.nn.sigmoid(gates[:, 3 * Hp:4 * Hp])
        c = f_g * c + i_g * g_g
        h = o_g * jnp.tanh(c)
        # Output projection: XLU lane-reduce, off the h->h dependency chain.
        y_ref[:, t:t + 1] = jnp.sum(h * w_out, axis=-1, keepdims=True) + b_out

    # Carry the recurrent state to the next time chunk.
    h_ref[...] = h
    c_ref[...] = c


def lstm_model_forward(x, params, hidden=HIDDEN):
    """x: (B, T, 1) float32 -> (B, T, 1) float32 (matches torch lstmModel)."""
    B, T, C = x.shape
    assert C == 1
    H = hidden
    Hp = max(128, _round_up(H, 128))     # gate slices on exact vreg-lane bounds

    # Tiling: batch on sublanes, time on lanes.
    TILE_B = min(_round_up(B, 8), 256)
    Bp = _round_up(B, TILE_B)
    if T <= 128:
        Tc, Tp = T, T                    # single full-extent time chunk
    else:
        Tc = 128
        Tp = _round_up(T, 128)
    grid = (Bp // TILE_B, Tp // Tc)

    # Batch-major, zero-padded input (padded rows / steps are sliced off below).
    x_bt = x.reshape(B, T).astype(jnp.float32)
    x_bt = jnp.pad(x_bt, ((0, Bp - B), (0, Tp - T)))                    # (Bp, Tp)

    # Parameter prep (zero-padded per gate; padded gate lanes stay inert).
    w_ih = _pad_gates(params["weight_ih"].astype(jnp.float32), H, Hp)   # (4Hp, 1)
    w_ih_row = w_ih.reshape(1, 4 * Hp)                                  # (1, 4Hp)
    b = _pad_gates((params["bias_ih"] + params["bias_hh"]).astype(jnp.float32), H, Hp)
    b_row = b.reshape(1, 4 * Hp)                                        # (1, 4Hp)
    w_hh = _pad_gates(params["weight_hh"].astype(jnp.float32), H, Hp)   # (4Hp, H)
    w_hh = jnp.pad(w_hh, ((0, 0), (0, Hp - H)))                         # (4Hp, Hp)
    w_hh_t = w_hh.T                                                     # (Hp, 4Hp)
    w_out_row = jnp.pad(params["linear_w"].astype(jnp.float32),
                        ((0, 0), (0, Hp - H)))                          # (1, Hp)
    b_out = params["linear_b"].astype(jnp.float32).reshape(1, 1)        # (1, 1)

    # Explicit scoped-VMEM budget: weights + double-buffered x/y tiles + carry.
    vmem_bytes = 4 * (Hp * 4 * Hp + 2 * 4 * Hp + Hp          # weights
                      + 2 * 2 * TILE_B * Tc                  # x, y (2 buffers)
                      + 2 * TILE_B * Hp)                      # h, c scratch
    vmem_limit = int(min(48 * 2 ** 20, max(16 * 2 ** 20, 4 * vmem_bytes)))

    y_bt = pl.pallas_call(
        lstm_kernel,
        out_shape=jax.ShapeDtypeStruct((Bp, Tp), jnp.float32),
        grid=grid,
        in_specs=[
            pl.BlockSpec((TILE_B, Tc), lambda b, t: (b, t)),        # x tile
            pl.BlockSpec((1, 4 * Hp), lambda b, t: (0, 0)),         # w_ih (resident)
            pl.BlockSpec((1, 4 * Hp), lambda b, t: (0, 0)),         # bias (resident)
            pl.BlockSpec((Hp, 4 * Hp), lambda b, t: (0, 0)),        # w_hh (resident)
            pl.BlockSpec((1, Hp), lambda b, t: (0, 0)),             # w_out (resident)
            pl.BlockSpec(memory_space=pltpu.SMEM),                  # b_out scalar
        ],
        out_specs=pl.BlockSpec((TILE_B, Tc), lambda b, t: (b, t)),
        scratch_shapes=[
            pltpu.VMEM((TILE_B, Hp), jnp.float32),   # h carry
            pltpu.VMEM((TILE_B, Hp), jnp.float32),   # c carry
        ],
        compiler_params=pltpu.CompilerParams(
            dimension_semantics=("parallel", "arbitrary"),
            vmem_limit_bytes=vmem_limit,
        ),
    )(x_bt, w_ih_row, b_row, w_hh_t, w_out_row, b_out)

    # (Bp, Tp) -> (B, T, 1)
    return y_bt[:B, :T][..., None]


def init_params(key, hidden=HIDDEN, input_size=1):
    """Deterministic init matching PyTorch parameter shapes (U(-k, k), k=1/sqrt(H))."""
    ks = jax.random.split(key, 6)
    k = 1.0 / jnp.sqrt(hidden)
    return {
        "weight_ih": jax.random.uniform(ks[0], (4 * hidden, input_size), jnp.float32, -k, k),
        "weight_hh": jax.random.uniform(ks[1], (4 * hidden, hidden), jnp.float32, -k, k),
        "bias_ih":   jax.random.uniform(ks[2], (4 * hidden,), jnp.float32, -k, k),
        "bias_hh":   jax.random.uniform(ks[3], (4 * hidden,), jnp.float32, -k, k),
        "linear_w":  jax.random.uniform(ks[4], (1, hidden), jnp.float32, -k, k),
        "linear_b":  jax.random.uniform(ks[5], (1,), jnp.float32, -k, k),
    }


def reference_forward(x, params):
    """Pure-JAX reference of the same math (sanity check)."""
    B, T, _ = x.shape
    H = HIDDEN
    w_ih = params["weight_ih"]  # (4H, 1)
    w_hh = params["weight_hh"]  # (4H, H)
    b = params["bias_ih"] + params["bias_hh"]

    def step(carry, x_t):
        h, c = carry
        gates = x_t @ w_ih.T + h @ w_hh.T + b      # (B, 4H)
        i_g = jax.nn.sigmoid(gates[:, 0:H])
        f_g = jax.nn.sigmoid(gates[:, H:2 * H])
        g_g = jnp.tanh(gates[:, 2 * H:3 * H])
        o_g = jax.nn.sigmoid(gates[:, 3 * H:4 * H])
        c_new = f_g * c + i_g * g_g
        h_new = o_g * jnp.tanh(c_new)
        return (h_new, c_new), h_new

    h0 = jnp.zeros((B, H), jnp.float32)
    c0 = jnp.zeros((B, H), jnp.float32)
    _, hs = lax.scan(step, (h0, c0), jnp.swapaxes(x, 0, 1))       # (T, B, H)
    hs = jnp.swapaxes(hs, 0, 1)                                    # (B, T, H)
    y = hs @ params["linear_w"].T + params["linear_b"]             # (B, T, 1)
    return y


if __name__ == "__main__":
    key = jax.random.PRNGKey(0)
    k_param, k_x = jax.random.split(key)
    B, T = 2, 8
    params = init_params(k_param)
    x = jax.random.normal(k_x, (B, T, 1), jnp.float32)

    y = jax.block_until_ready(lstm_model_forward(x, params))
    y_ref = jax.block_until_ready(reference_forward(x, params))

    assert y.shape == (B, T, 1)
    assert jnp.allclose(y, y_ref, atol=1e-5, rtol=1e-5), "mismatch vs reference"

    print("KERNEL_OK")
</pallas_src>

<mosaic_0001>
module attributes {stable_mosaic.version = 11 : i64} {
  func.func @lstm_kernel(%arg0: i32, %arg1: i32, %arg2: memref<8x8xf32, #tpu.memory_space<vmem>>, %arg3: memref<1x512xf32, #tpu.memory_space<vmem>>, %arg4: memref<1x512xf32, #tpu.memory_space<vmem>>, %arg5: memref<128x512xf32, #tpu.memory_space<vmem>>, %arg6: memref<1x128xf32, #tpu.memory_space<vmem>>, %arg7: memref<1x1xf32, #tpu.memory_space<smem>>, %arg8: memref<8x8xf32, #tpu.memory_space<vmem>>, %arg9: memref<8x128xf32, #tpu.memory_space<vmem>>, %arg10: memref<8x128xf32, #tpu.memory_space<vmem>>) attributes {dimension_semantics = [#tpu.dimension_semantics<parallel>, #tpu.dimension_semantics<arbitrary>], iteration_bounds = array<i64: 1, 1>, scalar_prefetch = 0 : i64, scratch_operands = 2 : i64, tpu.core_type = #tpu.core_type<tc>, window_params = [{transform_indices = @transform_0, window_bounds = array<i64: 8, 8>}, {pipeline_mode = #tpu.pipeline_mode<synchronous>, transform_indices = @transform_1, window_bounds = array<i64: 1, 512>}, {pipeline_mode = #tpu.pipeline_mode<synchronous>, transform_indices = @transform_2, window_bounds = array<i64: 1, 512>}, {pipeline_mode = #tpu.pipeline_mode<synchronous>, transform_indices = @transform_3, window_bounds = array<i64: 128, 512>}, {pipeline_mode = #tpu.pipeline_mode<synchronous>, transform_indices = @transform_4, window_bounds = array<i64: 1, 128>}, {transform_indices = @transform_5, window_bounds = array<i64: 1, 1>}, {transform_indices = @transform_6, window_bounds = array<i64: 8, 8>}]} {
    %c0_i32 = arith.constant 0 : i32
    %0 = arith.cmpi eq, %arg1, %c0_i32 : i32
    %1 = arith.extui %0 : i1 to i32
    %c0_i32_0 = arith.constant 0 : i32
    %2 = arith.cmpi ne, %1, %c0_i32_0 : i32
    scf.if %2 {
      %cst_82 = arith.constant 0.000000e+00 : f32
      %332 = vector.broadcast %cst_82 : f32 to vector<8x128xf32>
      %c0_83 = arith.constant 0 : index
      %c0_84 = arith.constant 0 : index
      %333 = vector.load %arg9[%c0_83, %c0_84] : memref<8x128xf32, #tpu.memory_space<vmem>>, vector<8x128xf32>
      tpu.vector_store %arg9[%c0_83, %c0_84], %332 {strides = array<i32>} : memref<8x128xf32, #tpu.memory_space<vmem>>, vector<8x128xf32>,
      %cst_85 = arith.constant 0.000000e+00 : f32
      %334 = vector.broadcast %cst_85 : f32 to vector<8x128xf32>
      %c0_86 = arith.constant 0 : index
      %c0_87 = arith.constant 0 : index
      %335 = vector.load %arg10[%c0_86, %c0_87] : memref<8x128xf32, #tpu.memory_space<vmem>>, vector<8x128xf32>
      tpu.vector_store %arg10[%c0_86, %c0_87], %334 {strides = array<i32>} : memref<8x128xf32, #tpu.memory_space<vmem>>, vector<8x128xf32>,
    } else {
    }
    %c0 = arith.constant 0 : index
    %c0_1 = arith.constant 0 : index
    %3 = vector.load %arg3[%c0, %c0_1] : memref<1x512xf32, #tpu.memory_space<vmem>>, vector<1x512xf32>
    %c0_2 = arith.constant 0 : index
    %c0_3 = arith.constant 0 : index
    %4 = vector.load %arg4[%c0_2, %c0_3] : memref<1x512xf32, #tpu.memory_space<vmem>>, vector<1x512xf32>
    %c0_4 = arith.constant 0 : index
    %c0_5 = arith.constant 0 : index
    %5 = vector.load %arg5[%c0_4, %c0_5] : memref<128x512xf32, #tpu.memory_space<vmem>>, vector<128x512xf32>
    %c0_6 = arith.constant 0 : index
    %c0_7 = arith.constant 0 : index
    %6 = vector.load %arg6[%c0_6, %c0_7] : memref<1x128xf32, #tpu.memory_space<vmem>>, vector<1x128xf32>
    %c0_8 = arith.constant 0 : index
    %c0_9 = arith.constant 0 : index
    %7 = memref.load %arg7[%c0_8, %c0_9] : memref<1x1xf32, #tpu.memory_space<smem>>
    %c0_10 = arith.constant 0 : index
    %c0_11 = arith.constant 0 : index
    %8 = vector.load %arg9[%c0_10, %c0_11] : memref<8x128xf32, #tpu.memory_space<vmem>>, vector<8x128xf32>
    %c0_12 = arith.constant 0 : index
    %c0_13 = arith.constant 0 : index
    %9 = vector.load %arg10[%c0_12, %c0_13] : memref<8x128xf32, #tpu.memory_space<vmem>>, vector<8x128xf32>
    %c0_14 = arith.constant 0 : index
    %c0_15 = arith.constant 0 : index
    %10 = vector.load %arg2[%c0_14, %c0_15] : memref<8x8xf32, #tpu.memory_space<vmem>>, vector<8x1xf32>
    %11 = vector.broadcast %10 : vector<8x1xf32> to vector<8x512xf32>
    %12 = vector.broadcast %3 : vector<1x512xf32> to vector<8x512xf32>
    %13 = arith.mulf %11, %12 : vector<8x512xf32>
    %14 = vector.broadcast %4 : vector<1x512xf32> to vector<8x512xf32>
    %15 = arith.addf %13, %14 : vector<8x512xf32>
    %cst = arith.constant dense<0.000000e+00> : vector<8x512xf32>
    %16 = tpu.matmul %8, %5, %cst {dimension_numbers = #tpu.dot_dimension_numbers<[1], [0], [0], [1], [0, 0, 1, 1], [], []>} : vector<8x128xf32>, vector<128x512xf32>, vector<8x512xf32> -> vector<8x512xf32>
    %17 = arith.addf %15, %16 : vector<8x512xf32>
    %18 = vector.extract_strided_slice %17 {offsets = [0, 0], sizes = [8, 128], strides = [1, 1]} : vector<8x512xf32> to vector<8x128xf32>
    %19 = arith.negf %18 : vector<8x128xf32>
    %20 = math.exp %19 : vector<8x128xf32>
    %cst_16 = arith.constant 1.000000e+00 : f32
    %21 = vector.broadcast %cst_16 : f32 to vector<8x128xf32>
    %22 = arith.addf %21, %20 : vector<8x128xf32>
    %23 = arith.divf %21, %22 : vector<8x128xf32>
    %24 = vector.extract_strided_slice %17 {offsets = [0, 128], sizes = [8, 128], strides = [1, 1]} : vector<8x512xf32> to vector<8x128xf32>
    %25 = arith.negf %24 : vector<8x128xf32>
    %26 = math.exp %25 : vector<8x128xf32>
    %cst_17 = arith.constant 1.000000e+00 : f32
    %27 = vector.broadcast %cst_17 : f32 to vector<8x128xf32>
    %28 = arith.addf %27, %26 : vector<8x128xf32>
    %29 = arith.divf %27, %28 : vector<8x128xf32>
    %30 = vector.extract_strided_slice %17 {offsets = [0, 256], sizes = [8, 128], strides = [1, 1]} : vector<8x512xf32> to vector<8x128xf32>
    %31 = math.tanh %30 : vector<8x128xf32>
    %32 = vector.extract_strided_slice %17 {offsets = [0, 384], sizes = [8, 128], strides = [1, 1]} : vector<8x512xf32> to vector<8x128xf32>
    %33 = arith.negf %32 : vector<8x128xf32>
    %34 = math.exp %33 : vector<8x128xf32>
    %cst_18 = arith.constant 1.000000e+00 : f32
    %35 = vector.broadcast %cst_18 : f32 to vector<8x128xf32>
    %36 = arith.addf %35, %34 : vector<8x128xf32>
    %37 = arith.divf %35, %36 : vector<8x128xf32>
    %38 = arith.mulf %29, %9 : vector<8x128xf32>
    %39 = arith.mulf %23, %31 : vector<8x128xf32>
    %40 = arith.addf %38, %39 : vector<8x128xf32>
    %41 = math.tanh %40 : vector<8x128xf32>
    %42 = arith.mulf %37, %41 : vector<8x128xf32>
    %43 = vector.broadcast %6 : vector<1x128xf32> to vector<8x128xf32>
    %44 = arith.mulf %42, %43 : vector<8x128xf32>
    %cst_19 = arith.constant dense<0.000000e+00> : vector<8xf32>
    %45 = vector.multi_reduction <add>, %44, %cst_19 [1] : vector<8x128xf32> to vector<8xf32>
    %46 = vector.shape_cast %45 : vector<8xf32> to vector<8x1xf32>
    %47 = vector.broadcast %7 : f32 to vector<8x1xf32>
    %48 = arith.addf %46, %47 : vector<8x1xf32>
    %c0_20 = arith.constant 0 : index
    %c0_21 = arith.constant 0 : index
    %49 = vector.load %arg8[%c0_20, %c0_21] : memref<8x8xf32, #tpu.memory_space<vmem>>, vector<8x1xf32>
    tpu.vector_store %arg8[%c0_20, %c0_21], %48 {strides = array<i32>} : memref<8x8xf32, #tpu.memory_space<vmem>>, vector<8x1xf32>,
    %c0_22 = arith.constant 0 : index
    %c1 = arith.constant 1 : index
    %50 = vector.load %arg2[%c0_22, %c1] : memref<8x8xf32, #tpu.memory_space<vmem>>, vector<8x1xf32>
    %51 = vector.broadcast %50 : vector<8x1xf32> to vector<8x512xf32>
    %52 = vector.broadcast %3 : vector<1x512xf32> to vector<8x512xf32>
    %53 = arith.mulf %51, %52 : vector<8x512xf32>
    %54 = vector.broadcast %4 : vector<1x512xf32> to vector<8x512xf32>
    %55 = arith.addf %53, %54 : vector<8x512xf32>
    %cst_23 = arith.constant dense<0.000000e+00> : vector<8x512xf32>
    %56 = tpu.matmul %42, %5, %cst_23 {dimension_numbers = #tpu.dot_dimension_numbers<[1], [0], [0], [1], [0, 0, 1, 1], [], []>} : vector<8x128xf32>, vector<128x512xf32>, vector<8x512xf32> -> vector<8x512xf32>
    %57 = arith.addf %55, %56 : vector<8x512xf32>
    %58 = vector.extract_strided_slice %57 {offsets = [0, 0], sizes = [8, 128], strides = [1, 1]} : vector<8x512xf32> to vector<8x128xf32>
    %59 = arith.negf %58 : vector<8x128xf32>
    %60 = math.exp %59 : vector<8x128xf32>
    %cst_24 = arith.constant 1.000000e+00 : f32
    %61 = vector.broadcast %cst_24 : f32 to vector<8x128xf32>
    %62 = arith.addf %61, %60 : vector<8x128xf32>
    %63 = arith.divf %61, %62 : vector<8x128xf32>
    %64 = vector.extract_strided_slice %57 {offsets = [0, 128], sizes = [8, 128], strides = [1, 1]} : vector<8x512xf32> to vector<8x128xf32>
    %65 = arith.negf %64 : vector<8x128xf32>
    %66 = math.exp %65 : vector<8x128xf32>
    %cst_25 = arith.constant 1.000000e+00 : f32
    %67 = vector.broadcast %cst_25 : f32 to vector<8x128xf32>
    %68 = arith.addf %67, %66 : vector<8x128xf32>
    %69 = arith.divf %67, %68 : vector<8x128xf32>
    %70 = vector.extract_strided_slice %57 {offsets = [0, 256], sizes = [8, 128], strides = [1, 1]} : vector<8x512xf32> to vector<8x128xf32>
    %71 = math.tanh %70 : vector<8x128xf32>
    %72 = vector.extract_strided_slice %57 {offsets = [0, 384], sizes = [8, 128], strides = [1, 1]} : vector<8x512xf32> to vector<8x128xf32>
    %73 = arith.negf %72 : vector<8x128xf32>
    %74 = math.exp %73 : vector<8x128xf32>
    %cst_26 = arith.constant 1.000000e+00 : f32
    %75 = vector.broadcast %cst_26 : f32 to vector<8x128xf32>
    %76 = arith.addf %75, %74 : vector<8x128xf32>
    %77 = arith.divf %75, %76 : vector<8x128xf32>
    %78 = arith.mulf %69, %40 : vector<8x128xf32>
    %79 = arith.mulf %63, %71 : vector<8x128xf32>
    %80 = arith.addf %78, %79 : vector<8x128xf32>
    %81 = math.tanh %80 : vector<8x128xf32>
    %82 = arith.mulf %77, %81 : vector<8x128xf32>
    %83 = vector.broadcast %6 : vector<1x128xf32> to vector<8x128xf32>
    %84 = arith.mulf %82, %83 : vector<8x128xf32>
    %cst_27 = arith.constant dense<0.000000e+00> : vector<8xf32>
    %85 = vector.multi_reduction <add>, %84, %cst_27 [1] : vector<8x128xf32> to vector<8xf32>
    %86 = vector.shape_cast %85 : vector<8xf32> to vector<8x1xf32>
    %87 = vector.broadcast %7 : f32 to vector<8x1xf32>
    %88 = arith.addf %86, %87 : vector<8x1xf32>
    %c0_28 = arith.constant 0 : index
    %c1_29 = arith.constant 1 : index
    %89 = vector.load %arg8[%c0_28, %c1_29] : memref<8x8xf32, #tpu.memory_space<vmem>>, vector<8x1xf32>
    tpu.vector_store %arg8[%c0_28, %c1_29], %88 {strides = array<i32>} : memref<8x8xf32, #tpu.memory_space<vmem>>, vector<8x1xf32>,
    %c0_30 = arith.constant 0 : index
    %c2 = arith.constant 2 : index
    %90 = vector.load %arg2[%c0_30, %c2] : memref<8x8xf32, #tpu.memory_space<vmem>>, vector<8x1xf32>
    %91 = vector.broadcast %90 : vector<8x1xf32> to vector<8x512xf32>
    %92 = vector.broadcast %3 : vector<1x512xf32> to vector<8x512xf32>
    %93 = arith.mulf %91, %92 : vector<8x512xf32>
    %94 = vector.broadcast %4 : vector<1x512xf32> to vector<8x512xf32>
    %95 = arith.addf %93, %94 : vector<8x512xf32>
    %cst_31 = arith.constant dense<0.000000e+00> : vector<8x512xf32>
    %96 = tpu.matmul %82, %5, %cst_31 {dimension_numbers = #tpu.dot_dimension_numbers<[1], [0], [0], [1], [0, 0, 1, 1], [], []>} : vector<8x128xf32>, vector<128x512xf32>, vector<8x512xf32> -> vector<8x512xf32>
    %97 = arith.addf %95, %96 : vector<8x512xf32>
    %98 = vector.extract_strided_slice %97 {offsets = [0, 0], sizes = [8, 128], strides = [1, 1]} : vector<8x512xf32> to vector<8x128xf32>
    %99 = arith.negf %98 : vector<8x128xf32>
    %100 = math.exp %99 : vector<8x128xf32>
    %cst_32 = arith.constant 1.000000e+00 : f32
    %101 = vector.broadcast %cst_32 : f32 to vector<8x128xf32>
    %102 = arith.addf %101, %100 : vector<8x128xf32>
    %103 = arith.divf %101, %102 : vector<8x128xf32>
    %104 = vector.extract_strided_slice %97 {offsets = [0, 128], sizes = [8, 128], strides = [1, 1]} : vector<8x512xf32> to vector<8x128xf32>
    %105 = arith.negf %104 : vector<8x128xf32>
    %106 = math.exp %105 : vector<8x128xf32>
    %cst_33 = arith.constant 1.000000e+00 : f32
    %107 = vector.broadcast %cst_33 : f32 to vector<8x128xf32>
    %108 = arith.addf %107, %106 : vector<8x128xf32>
    %109 = arith.divf %107, %108 : vector<8x128xf32>
    %110 = vector.extract_strided_slice %97 {offsets = [0, 256], sizes = [8, 128], strides = [1, 1]} : vector<8x512xf32> to vector<8x128xf32>
    %111 = math.tanh %110 : vector<8x128xf32>
    %112 = vector.extract_strided_slice %97 {offsets = [0, 384], sizes = [8, 128], strides = [1, 1]} : vector<8x512xf32> to vector<8x128xf32>
    %113 = arith.negf %112 : vector<8x128xf32>
    %114 = math.exp %113 : vector<8x128xf32>
    %cst_34 = arith.constant 1.000000e+00 : f32
    %115 = vector.broadcast %cst_34 : f32 to vector<8x128xf32>
    %116 = arith.addf %115, %114 : vector<8x128xf32>
    %117 = arith.divf %115, %116 : vector<8x128xf32>
    %118 = arith.mulf %109, %80 : vector<8x128xf32>
    %119 = arith.mulf %103, %111 : vector<8x128xf32>
    %120 = arith.addf %118, %119 : vector<8x128xf32>
    %121 = math.tanh %120 : vector<8x128xf32>
    %122 = arith.mulf %117, %121 : vector<8x128xf32>
    %123 = vector.broadcast %6 : vector<1x128xf32> to vector<8x128xf32>
    %124 = arith.mulf %122, %123 : vector<8x128xf32>
    %cst_35 = arith.constant dense<0.000000e+00> : vector<8xf32>
    %125 = vector.multi_reduction <add>, %124, %cst_35 [1] : vector<8x128xf32> to vector<8xf32>
    %126 = vector.shape_cast %125 : vector<8xf32> to vector<8x1xf32>
    %127 = vector.broadcast %7 : f32 to vector<8x1xf32>
    %128 = arith.addf %126, %127 : vector<8x1xf32>
    %c0_36 = arith.constant 0 : index
    %c2_37 = arith.constant 2 : index
    %129 = vector.load %arg8[%c0_36, %c2_37] : memref<8x8xf32, #tpu.memory_space<vmem>>, vector<8x1xf32>
    tpu.vector_store %arg8[%c0_36, %c2_37], %128 {strides = array<i32>} : memref<8x8xf32, #tpu.memory_space<vmem>>, vector<8x1xf32>,
    %c0_38 = arith.constant 0 : index
    %c3 = arith.constant 3 : index
    %130 = vector.load %arg2[%c0_38, %c3] : memref<8x8xf32, #tpu.memory_space<vmem>>, vector<8x1xf32>
    %131 = vector.broadcast %130 : vector<8x1xf32> to vector<8x512xf32>
    %132 = vector.broadcast %3 : vector<1x512xf32> to vector<8x512xf32>
    %133 = arith.mulf %131, %132 : vector<8x512xf32>
    %134 = vector.broadcast %4 : vector<1x512xf32> to vector<8x512xf32>
    %135 = arith.addf %133, %134 : vector<8x512xf32>
    %cst_39 = arith.constant dense<0.000000e+00> : vector<8x512xf32>
    %136 = tpu.matmul %122, %5, %cst_39 {dimension_numbers = #tpu.dot_dimension_numbers<[1], [0], [0], [1], [0, 0, 1, 1], [], []>} : vector<8x128xf32>, vector<128x512xf32>, vector<8x512xf32> -> vector<8x512xf32>
    %137 = arith.addf %135, %136 : vector<8x512xf32>
    %138 = vector.extract_strided_slice %137 {offsets = [0, 0], sizes = [8, 128], strides = [1, 1]} : vector<8x512xf32> to vector<8x128xf32>
    %139 = arith.negf %138 : vector<8x128xf32>
    %140 = math.exp %139 : vector<8x128xf32>
    %cst_40 = arith.constant 1.000000e+00 : f32
    %141 = vector.broadcast %cst_40 : f32 to vector<8x128xf32>
    %142 = arith.addf %141, %140 : vector<8x128xf32>
    %143 = arith.divf %141, %142 : vector<8x128xf32>
    %144 = vector.extract_strided_slice %137 {offsets = [0, 128], sizes = [8, 128], strides = [1, 1]} : vector<8x512xf32> to vector<8x128xf32>
    %145 = arith.negf %144 : vector<8x128xf32>
    %146 = math.exp %145 : vector<8x128xf32>
    %cst_41 = arith.constant 1.000000e+00 : f32
    %147 = vector.broadcast %cst_41 : f32 to vector<8x128xf32>
    %148 = arith.addf %147, %146 : vector<8x128xf32>
    %149 = arith.divf %147, %148 : vector<8x128xf32>
    %150 = vector.extract_strided_slice %137 {offsets = [0, 256], sizes = [8, 128], strides = [1, 1]} : vector<8x512xf32> to vector<8x128xf32>
    %151 = math.tanh %150 : vector<8x128xf32>
    %152 = vector.extract_strided_slice %137 {offsets = [0, 384], sizes = [8, 128], strides = [1, 1]} : vector<8x512xf32> to vector<8x128xf32>
    %153 = arith.negf %152 : vector<8x128xf32>
    %154 = math.exp %153 : vector<8x128xf32>
    %cst_42 = arith.constant 1.000000e+00 : f32
    %155 = vector.broadcast %cst_42 : f32 to vector<8x128xf32>
    %156 = arith.addf %155, %154 : vector<8x128xf32>
    %157 = arith.divf %155, %156 : vector<8x128xf32>
    %158 = arith.mulf %149, %120 : vector<8x128xf32>
    %159 = arith.mulf %143, %151 : vector<8x128xf32>
    %160 = arith.addf %158, %159 : vector<8x128xf32>
    %161 = math.tanh %160 : vector<8x128xf32>
    %162 = arith.mulf %157, %161 : vector<8x128xf32>
    %163 = vector.broadcast %6 : vector<1x128xf32> to vector<8x128xf32>
    %164 = arith.mulf %162, %163 : vector<8x128xf32>
    %cst_43 = arith.constant dense<0.000000e+00> : vector<8xf32>
    %165 = vector.multi_reduction <add>, %164, %cst_43 [1] : vector<8x128xf32> to vector<8xf32>
    %166 = vector.shape_cast %165 : vector<8xf32> to vector<8x1xf32>
    %167 = vector.broadcast %7 : f32 to vector<8x1xf32>
    %168 = arith.addf %166, %167 : vector<8x1xf32>
    %c0_44 = arith.constant 0 : index
    %c3_45 = arith.constant 3 : index
    %169 = vector.load %arg8[%c0_44, %c3_45] : memref<8x8xf32, #tpu.memory_space<vmem>>, vector<8x1xf32>
    tpu.vector_store %arg8[%c0_44, %c3_45], %168 {strides = array<i32>} : memref<8x8xf32, #tpu.memory_space<vmem>>, vector<8x1xf32>,
    %c0_46 = arith.constant 0 : index
    %c4 = arith.constant 4 : index
    %170 = vector.load %arg2[%c0_46, %c4] : memref<8x8xf32, #tpu.memory_space<vmem>>, vector<8x1xf32>
    %171 = vector.broadcast %170 : vector<8x1xf32> to vector<8x512xf32>
    %172 = vector.broadcast %3 : vector<1x512xf32> to vector<8x512xf32>
    %173 = arith.mulf %171, %172 : vector<8x512xf32>
    %174 = vector.broadcast %4 : vector<1x512xf32> to vector<8x512xf32>
    %175 = arith.addf %173, %174 : vector<8x512xf32>
    %cst_47 = arith.constant dense<0.000000e+00> : vector<8x512xf32>
    %176 = tpu.matmul %162, %5, %cst_47 {dimension_numbers = #tpu.dot_dimension_numbers<[1], [0], [0], [1], [0, 0, 1, 1], [], []>} : vector<8x128xf32>, vector<128x512xf32>, vector<8x512xf32> -> vector<8x512xf32>
    %177 = arith.addf %175, %176 : vector<8x512xf32>
    %178 = vector.extract_strided_slice %177 {offsets = [0, 0], sizes = [8, 128], strides = [1, 1]} : vector<8x512xf32> to vector<8x128xf32>
    %179 = arith.negf %178 : vector<8x128xf32>
    %180 = math.exp %179 : vector<8x128xf32>
    %cst_48 = arith.constant 1.000000e+00 : f32
    %181 = vector.broadcast %cst_48 : f32 to vector<8x128xf32>
    %182 = arith.addf %181, %180 : vector<8x128xf32>
    %183 = arith.divf %181, %182 : vector<8x128xf32>
    %184 = vector.extract_strided_slice %177 {offsets = [0, 128], sizes = [8, 128], strides = [1, 1]} : vector<8x512xf32> to vector<8x128xf32>
    %185 = arith.negf %184 : vector<8x128xf32>
    %186 = math.exp %185 : vector<8x128xf32>
    %cst_49 = arith.constant 1.000000e+00 : f32
    %187 = vector.broadcast %cst_49 : f32 to vector<8x128xf32>
    %188 = arith.addf %187, %186 : vector<8x128xf32>
    %189 = arith.divf %187, %188 : vector<8x128xf32>
    %190 = vector.extract_strided_slice %177 {offsets = [0, 256], sizes = [8, 128], strides = [1, 1]} : vector<8x512xf32> to vector<8x128xf32>
    %191 = math.tanh %190 : vector<8x128xf32>
    %192 = vector.extract_strided_slice %177 {offsets = [0, 384], sizes = [8, 128], strides = [1, 1]} : vector<8x512xf32> to vector<8x128xf32>
    %193 = arith.negf %192 : vector<8x128xf32>
    %194 = math.exp %193 : vector<8x128xf32>
    %cst_50 = arith.constant 1.000000e+00 : f32
    %195 = vector.broadcast %cst_50 : f32 to vector<8x128xf32>
    %196 = arith.addf %195, %194 : vector<8x128xf32>
    %197 = arith.divf %195, %196 : vector<8x128xf32>
    %198 = arith.mulf %189, %160 : vector<8x128xf32>
    %199 = arith.mulf %183, %191 : vector<8x128xf32>
    %200 = arith.addf %198, %199 : vector<8x128xf32>
    %201 = math.tanh %200 : vector<8x128xf32>
    %202 = arith.mulf %197, %201 : vector<8x128xf32>
    %203 = vector.broadcast %6 : vector<1x128xf32> to vector<8x128xf32>
    %204 = arith.mulf %202, %203 : vector<8x128xf32>
    %cst_51 = arith.constant dense<0.000000e+00> : vector<8xf32>
    %205 = vector.multi_reduction <add>, %204, %cst_51 [1] : vector<8x128xf32> to vector<8xf32>
    %206 = vector.shape_cast %205 : vector<8xf32> to vector<8x1xf32>
    %207 = vector.broadcast %7 : f32 to vector<8x1xf32>
    %208 = arith.addf %206, %207 : vector<8x1xf32>
    %c0_52 = arith.constant 0 : index
    %c4_53 = arith.constant 4 : index
    %209 = vector.load %arg8[%c0_52, %c4_53] : memref<8x8xf32, #tpu.memory_space<vmem>>, vector<8x1xf32>
    tpu.vector_store %arg8[%c0_52, %c4_53], %208 {strides = array<i32>} : memref<8x8xf32, #tpu.memory_space<vmem>>, vector<8x1xf32>,
    %c0_54 = arith.constant 0 : index
    %c5 = arith.constant 5 : index
    %210 = vector.load %arg2[%c0_54, %c5] : memref<8x8xf32, #tpu.memory_space<vmem>>, vector<8x1xf32>
    %211 = vector.broadcast %210 : vector<8x1xf32> to vector<8x512xf32>
    %212 = vector.broadcast %3 : vector<1x512xf32> to vector<8x512xf32>
    %213 = arith.mulf %211, %212 : vector<8x512xf32>
    %214 = vector.broadcast %4 : vector<1x512xf32> to vector<8x512xf32>
    %215 = arith.addf %213, %214 : vector<8x512xf32>
    %cst_55 = arith.constant dense<0.000000e+00> : vector<8x512xf32>
    %216 = tpu.matmul %202, %5, %cst_55 {dimension_numbers = #tpu.dot_dimension_numbers<[1], [0], [0], [1], [0, 0, 1, 1], [], []>} : vector<8x128xf32>, vector<128x512xf32>, vector<8x512xf32> -> vector<8x512xf32>
    %217 = arith.addf %215, %216 : vector<8x512xf32>
    %218 = vector.extract_strided_slice %217 {offsets = [0, 0], sizes = [8, 128], strides = [1, 1]} : vector<8x512xf32> to vector<8x128xf32>
    %219 = arith.negf %218 : vector<8x128xf32>
    %220 = math.exp %219 : vector<8x128xf32>
    %cst_56 = arith.constant 1.000000e+00 : f32
    %221 = vector.broadcast %cst_56 : f32 to vector<8x128xf32>
    %222 = arith.addf %221, %220 : vector<8x128xf32>
    %223 = arith.divf %221, %222 : vector<8x128xf32>
    %224 = vector.extract_strided_slice %217 {offsets = [0, 128], sizes = [8, 128], strides = [1, 1]} : vector<8x512xf32> to vector<8x128xf32>
    %225 = arith.negf %224 : vector<8x128xf32>
    %226 = math.exp %225 : vector<8x128xf32>
    %cst_57 = arith.constant 1.000000e+00 : f32
    %227 = vector.broadcast %cst_57 : f32 to vector<8x128xf32>
    %228 = arith.addf %227, %226 : vector<8x128xf32>
    %229 = arith.divf %227, %228 : vector<8x128xf32>
    %230 = vector.extract_strided_slice %217 {offsets = [0, 256], sizes = [8, 128], strides = [1, 1]} : vector<8x512xf32> to vector<8x128xf32>
    %231 = math.tanh %230 : vector<8x128xf32>
    %232 = vector.extract_strided_slice %217 {offsets = [0, 384], sizes = [8, 128], strides = [1, 1]} : vector<8x512xf32> to vector<8x128xf32>
    %233 = arith.negf %232 : vector<8x128xf32>
    %234 = math.exp %233 : vector<8x128xf32>
    %cst_58 = arith.constant 1.000000e+00 : f32
    %235 = vector.broadcast %cst_58 : f32 to vector<8x128xf32>
    %236 = arith.addf %235, %234 : vector<8x128xf32>
    %237 = arith.divf %235, %236 : vector<8x128xf32>
    %238 = arith.mulf %229, %200 : vector<8x128xf32>
    %239 = arith.mulf %223, %231 : vector<8x128xf32>
    %240 = arith.addf %238, %239 : vector<8x128xf32>
    %241 = math.tanh %240 : vector<8x128xf32>
    %242 = arith.mulf %237, %241 : vector<8x128xf32>
    %243 = vector.broadcast %6 : vector<1x128xf32> to vector<8x128xf32>
    %244 = arith.mulf %242, %243 : vector<8x128xf32>
    %cst_59 = arith.constant dense<0.000000e+00> : vector<8xf32>
    %245 = vector.multi_reduction <add>, %244, %cst_59 [1] : vector<8x128xf32> to vector<8xf32>
    %246 = vector.shape_cast %245 : vector<8xf32> to vector<8x1xf32>
    %247 = vector.broadcast %7 : f32 to vector<8x1xf32>
    %248 = arith.addf %246, %247 : vector<8x1xf32>
    %c0_60 = arith.constant 0 : index
    %c5_61 = arith.constant 5 : index
    %249 = vector.load %arg8[%c0_60, %c5_61] : memref<8x8xf32, #tpu.memory_space<vmem>>, vector<8x1xf32>
    tpu.vector_store %arg8[%c0_60, %c5_61], %248 {strides = array<i32>} : memref<8x8xf32, #tpu.memory_space<vmem>>, vector<8x1xf32>,
    %c0_62 = arith.constant 0 : index
    %c6 = arith.constant 6 : index
    %250 = vector.load %arg2[%c0_62, %c6] : memref<8x8xf32, #tpu.memory_space<vmem>>, vector<8x1xf32>
    %251 = vector.broadcast %250 : vector<8x1xf32> to vector<8x512xf32>
    %252 = vector.broadcast %3 : vector<1x512xf32> to vector<8x512xf32>
    %253 = arith.mulf %251, %252 : vector<8x512xf32>
    %254 = vector.broadcast %4 : vector<1x512xf32> to vector<8x512xf32>
    %255 = arith.addf %253, %254 : vector<8x512xf32>
    %cst_63 = arith.constant dense<0.000000e+00> : vector<8x512xf32>
    %256 = tpu.matmul %242, %5, %cst_63 {dimension_numbers = #tpu.dot_dimension_numbers<[1], [0], [0], [1], [0, 0, 1, 1], [], []>} : vector<8x128xf32>, vector<128x512xf32>, vector<8x512xf32> -> vector<8x512xf32>
    %257 = arith.addf %255, %256 : vector<8x512xf32>
    %258 = vector.extract_strided_slice %257 {offsets = [0, 0], sizes = [8, 128], strides = [1, 1]} : vector<8x512xf32> to vector<8x128xf32>
    %259 = arith.negf %258 : vector<8x128xf32>
    %260 = math.exp %259 : vector<8x128xf32>
    %cst_64 = arith.constant 1.000000e+00 : f32
    %261 = vector.broadcast %cst_64 : f32 to vector<8x128xf32>
    %262 = arith.addf %261, %260 : vector<8x128xf32>
    %263 = arith.divf %261, %262 : vector<8x128xf32>
    %264 = vector.extract_strided_slice %257 {offsets = [0, 128], sizes = [8, 128], strides = [1, 1]} : vector<8x512xf32> to vector<8x128xf32>
    %265 = arith.negf %264 : vector<8x128xf32>
    %266 = math.exp %265 : vector<8x128xf32>
    %cst_65 = arith.constant 1.000000e+00 : f32
    %267 = vector.broadcast %cst_65 : f32 to vector<8x128xf32>
    %268 = arith.addf %267, %266 : vector<8x128xf32>
    %269 = arith.divf %267, %268 : vector<8x128xf32>
    %270 = vector.extract_strided_slice %257 {offsets = [0, 256], sizes = [8, 128], strides = [1, 1]} : vector<8x512xf32> to vector<8x128xf32>
    %271 = math.tanh %270 : vector<8x128xf32>
    %272 = vector.extract_strided_slice %257 {offsets = [0, 384], sizes = [8, 128], strides = [1, 1]} : vector<8x512xf32> to vector<8x128xf32>
    %273 = arith.negf %272 : vector<8x128xf32>
    %274 = math.exp %273 : vector<8x128xf32>
    %cst_66 = arith.constant 1.000000e+00 : f32
    %275 = vector.broadcast %cst_66 : f32 to vector<8x128xf32>
    %276 = arith.addf %275, %274 : vector<8x128xf32>
    %277 = arith.divf %275, %276 : vector<8x128xf32>
    %278 = arith.mulf %269, %240 : vector<8x128xf32>
    %279 = arith.mulf %263, %271 : vector<8x128xf32>
    %280 = arith.addf %278, %279 : vector<8x128xf32>
    %281 = math.tanh %280 : vector<8x128xf32>
    %282 = arith.mulf %277, %281 : vector<8x128xf32>
    %283 = vector.broadcast %6 : vector<1x128xf32> to vector<8x128xf32>
    %284 = arith.mulf %282, %283 : vector<8x128xf32>
    %cst_67 = arith.constant dense<0.000000e+00> : vector<8xf32>
    %285 = vector.multi_reduction <add>, %284, %cst_67 [1] : vector<8x128xf32> to vector<8xf32>
    %286 = vector.shape_cast %285 : vector<8xf32> to vector<8x1xf32>
    %287 = vector.broadcast %7 : f32 to vector<8x1xf32>
    %288 = arith.addf %286, %287 : vector<8x1xf32>
    %c0_68 = arith.constant 0 : index
    %c6_69 = arith.constant 6 : index
    %289 = vector.load %arg8[%c0_68, %c6_69] : memref<8x8xf32, #tpu.memory_space<vmem>>, vector<8x1xf32>
    tpu.vector_store %arg8[%c0_68, %c6_69], %288 {strides = array<i32>} : memref<8x8xf32, #tpu.memory_space<vmem>>, vector<8x1xf32>,
    %c0_70 = arith.constant 0 : index
    %c7 = arith.constant 7 : index
    %290 = vector.load %arg2[%c0_70, %c7] : memref<8x8xf32, #tpu.memory_space<vmem>>, vector<8x1xf32>
    %291 = vector.broadcast %290 : vector<8x1xf32> to vector<8x512xf32>
    %292 = vector.broadcast %3 : vector<1x512xf32> to vector<8x512xf32>
    %293 = arith.mulf %291, %292 : vector<8x512xf32>
    %294 = vector.broadcast %4 : vector<1x512xf32> to vector<8x512xf32>
    %295 = arith.addf %293, %294 : vector<8x512xf32>
    %cst_71 = arith.constant dense<0.000000e+00> : vector<8x512xf32>
    %296 = tpu.matmul %282, %5, %cst_71 {dimension_numbers = #tpu.dot_dimension_numbers<[1], [0], [0], [1], [0, 0, 1, 1], [], []>} : vector<8x128xf32>, vector<128x512xf32>, vector<8x512xf32> -> vector<8x512xf32>
    %297 = arith.addf %295, %296 : vector<8x512xf32>
    %298 = vector.extract_strided_slice %297 {offsets = [0, 0], sizes = [8, 128], strides = [1, 1]} : vector<8x512xf32> to vector<8x128xf32>
    %299 = arith.negf %298 : vector<8x128xf32>
    %300 = math.exp %299 : vector<8x128xf32>
    %cst_72 = arith.constant 1.000000e+00 : f32
    %301 = vector.broadcast %cst_72 : f32 to vector<8x128xf32>
    %302 = arith.addf %301, %300 : vector<8x128xf32>
    %303 = arith.divf %301, %302 : vector<8x128xf32>
    %304 = vector.extract_strided_slice %297 {offsets = [0, 128], sizes = [8, 128], strides = [1, 1]} : vector<8x512xf32> to vector<8x128xf32>
    %305 = arith.negf %304 : vector<8x128xf32>
    %306 = math.exp %305 : vector<8x128xf32>
    %cst_73 = arith.constant 1.000000e+00 : f32
    %307 = vector.broadcast %cst_73 : f32 to vector<8x128xf32>
    %308 = arith.addf %307, %306 : vector<8x128xf32>
    %309 = arith.divf %307, %308 : vector<8x128xf32>
    %310 = vector.extract_strided_slice %297 {offsets = [0, 256], sizes = [8, 128], strides = [1, 1]} : vector<8x512xf32> to vector<8x128xf32>
    %311 = math.tanh %310 : vector<8x128xf32>
    %312 = vector.extract_strided_slice %297 {offsets = [0, 384], sizes = [8, 128], strides = [1, 1]} : vector<8x512xf32> to vector<8x128xf32>
    %313 = arith.negf %312 : vector<8x128xf32>
    %314 = math.exp %313 : vector<8x128xf32>
    %cst_74 = arith.constant 1.000000e+00 : f32
    %315 = vector.broadcast %cst_74 : f32 to vector<8x128xf32>
    %316 = arith.addf %315, %314 : vector<8x128xf32>
    %317 = arith.divf %315, %316 : vector<8x128xf32>
    %318 = arith.mulf %309, %280 : vector<8x128xf32>
    %319 = arith.mulf %303, %311 : vector<8x128xf32>
    %320 = arith.addf %318, %319 : vector<8x128xf32>
    %321 = math.tanh %320 : vector<8x128xf32>
    %322 = arith.mulf %317, %321 : vector<8x128xf32>
    %323 = vector.broadcast %6 : vector<1x128xf32> to vector<8x128xf32>
    %324 = arith.mulf %322, %323 : vector<8x128xf32>
    %cst_75 = arith.constant dense<0.000000e+00> : vector<8xf32>
    %325 = vector.multi_reduction <add>, %324, %cst_75 [1] : vector<8x128xf32> to vector<8xf32>
    %326 = vector.shape_cast %325 : vector<8xf32> to vector<8x1xf32>
    %327 = vector.broadcast %7 : f32 to vector<8x1xf32>
    %328 = arith.addf %326, %327 : vector<8x1xf32>
    %c0_76 = arith.constant 0 : index
    %c7_77 = arith.constant 7 : index
    %329 = vector.load %arg8[%c0_76, %c7_77] : memref<8x8xf32, #tpu.memory_space<vmem>>, vector<8x1xf32>
    tpu.vector_store %arg8[%c0_76, %c7_77], %328 {strides = array<i32>} : memref<8x8xf32, #tpu.memory_space<vmem>>, vector<8x1xf32>,
    %c0_78 = arith.constant 0 : index
    %c0_79 = arith.constant 0 : index
    %330 = vector.load %arg9[%c0_78, %c0_79] : memref<8x128xf32, #tpu.memory_space<vmem>>, vector<8x128xf32>
    tpu.vector_store %arg9[%c0_78, %c0_79], %322 {strides = array<i32>} : memref<8x128xf32, #tpu.memory_space<vmem>>, vector<8x128xf32>,
    %c0_80 = arith.constant 0 : index
    %c0_81 = arith.constant 0 : index
    %331 = vector.load %arg10[%c0_80, %c0_81] : memref<8x128xf32, #tpu.memory_space<vmem>>, vector<8x128xf32>
    tpu.vector_store %arg10[%c0_80, %c0_81], %320 {strides = array<i32>} : memref<8x128xf32, #tpu.memory_space<vmem>>, vector<8x128xf32>,
    return
  }
  func.func @transform_0(%arg0: i32, %arg1: i32) -> (i32, i32) {
    %c0_i32 = arith.constant 0 : i32
    return %arg0, %arg1 : i32, i32
  }
  func.func @transform_1(%arg0: i32, %arg1: i32) -> (i32, i32) {
    %c0_i32 = arith.constant 0 : i32
    %c0_i32_0 = arith.constant 0 : i32
    %c0_i32_1 = arith.constant 0 : i32
    return %c0_i32, %c0_i32_0 : i32, i32
  }
  func.func @transform_2(%arg0: i32, %arg1: i32) -> (i32, i32) {
    %c0_i32 = arith.constant 0 : i32
    %c0_i32_0 = arith.constant 0 : i32
    %c0_i32_1 = arith.constant 0 : i32
    return %c0_i32, %c0_i32_0 : i32, i32
  }
  func.func @transform_3(%arg0: i32, %arg1: i32) -> (i32, i32) {
    %c0_i32 = arith.constant 0 : i32
    %c0_i32_0 = arith.constant 0 : i32
    %c0_i32_1 = arith.constant 0 : i32
    return %c0_i32, %c0_i32_0 : i32, i32
  }
  func.func @transform_4(%arg0: i32, %arg1: i32) -> (i32, i32) {
    %c0_i32 = arith.constant 0 : i32
    %c0_i32_0 = arith.constant 0 : i32
    %c0_i32_1 = arith.constant 0 : i32
    return %c0_i32, %c0_i32_0 : i32, i32
  }
  func.func @transform_5(%arg0: i32, %arg1: i32) -> (i32, i32) {
    %c0_i32 = arith.constant 0 : i32
    %c0_i32_0 = arith.constant 0 : i32
    %c0_i32_1 = arith.constant 0 : i32
    return %c0_i32, %c0_i32_0 : i32, i32
  }
  func.func @transform_6(%arg0: i32, %arg1: i32) -> (i32, i32) {
    %c0_i32 = arith.constant 0 : i32
    return %arg0, %arg1 : i32, i32
  }
}

</mosaic_0001>

<bundles_post_ra>
// kernel: tpu_custom_call.1
= control target key start
LH: loop header
LB: loop body
LE: loop exit
PB: predicated region body
PF: predicated region fallthrough
CT: control target
= control target key end

     0   :  { %12 = vsyncpa [#allocation6], 0  ;;  %s3081_s0 = inlined_call_operand.hbm [shape: f32[8,8], index: 0, kind: input, shape index: {}]   ;;  %s3082_s1 = inlined_call_operand.vmem [shape: f32[1,512], index: 1, kind: input, shape index: {}]   ;;  %s3083_s2 = inlined_call_operand.vmem [shape: f32[1,512], index: 2, kind: input, shape index: {}]   ;;  %s3084_s3 = inlined_call_operand.hbm [shape: f32[128,512], index: 3, kind: input, shape index: {}]   ;;  %s3085_s4 = inlined_call_operand.vmem [shape: f32[1,128], index: 4, kind: input, shape index: {}]   ;;  %s3086_s5 = inlined_call_operand.<no memory space> [shape: f32[1,1], index: 5, kind: input, shape index: {}]   ;;  %s3087_s6 = inlined_call_operand.hbm [shape: f32[8,8], index: 6, kind: output, shape index: {}]  }
   0x1   :  { %13 = vsyncpa [#allocation9], 0 }
   0x2   :  { %14 = vsyncpa [#allocation7], 0  ;;  %s2475_s21 = smov [#allocation5]   ;;  %s2476_s23 = smov [#allocation8]  }
   0x3   :  { %s21_s22 = sshll.u32 %s2475_s21, 4  ;;  %s34_s24 = sshll.u32 %s2476_s23, 4  ;;  %s22_s22 = int_to_ptr.vmem [resolvable:$true] %s21_s22  ;;  %s2524_s24 = int_to_ptr.vmem [resolvable:$true] %s34_s24 }
   0x4   :  { %s2403_s27 = scalar_lea.hbm %s3081_s0, 128 }
   0x5   :  { %p2404_p0 = scmp.ne.s32.totalorder %s3081_s0, %s2403_s27  ;;  %p2407_p1 = scmp.lt.u32.totalorder %s2403_s27, %s3081_s0 }
   0x7   :  { %p2409_p2 = pnand %p2407_p1, %p2404_p0 }
   0x9   :  { %2412 = shalt.err (!%p2409_p2)
}
   0xa   :  { %s2413_s8 = scalar_lea.vmem %s22_s22, 128  ;;  %p2418_p4 = scmp.lt.s32.totalorder %s22_s22, %s22_s22 }
   0xb   :  { %p2414_p3 = scmp.ne.s32.totalorder %s22_s22, %s2413_s8  ;;  %p2419_p5 = scmp.lt.s32.totalorder %s2413_s8, %s2413_s8 }
   0xd   :  { %p2420_p6 = por %p2419_p5, %p2418_p4 }
   0xf   :  { %p2421_p7 = pnand %p2420_p6, %p2414_p3 }
  0x11   :  { %2424 = shalt.err (!%p2421_p7)
}
  0x12   :  { %24 = dma.hbm_to_vmem [thread:$0]  %s3081_s0, 128, %s22_s22, [#allocation6]  }
  0x13   :  { %s2425_s13 = scalar_lea.hbm %s3084_s3, 8192 }
  0x14   :  { %p2426_p8 = scmp.ne.s32.totalorder %s3084_s3, %s2425_s13  ;;  %p2429_p9 = scmp.lt.u32.totalorder %s2425_s13, %s3084_s3 }
  0x16   :  { %p2431_p10 = pnand %p2429_p9, %p2426_p8 }
  0x18   :  { %2434 = shalt.err (!%p2431_p10)
}
  0x19   :  { %s2435_s18 = scalar_lea.vmem %s2524_s24, 8192  ;;  %p2440_p12 = scmp.lt.s32.totalorder %s2524_s24, %s2524_s24 }
  0x1a   :  { %p2436_p11 = scmp.ne.s32.totalorder %s2524_s24, %s2435_s18  ;;  %p2441_p13 = scmp.lt.s32.totalorder %s2435_s18, %s2435_s18 }
  0x1c   :  { %p2442_p0 = por %p2441_p13, %p2440_p12 }
  0x1e   :  { %p2443_p1 = pnand %p2442_p0, %p2436_p11 }
  0x20   :  { %2446 = shalt.err (!%p2443_p1)
}
  0x21   :  { %s2477_s0 = smov 512   ;;  %s2478_s19 = smov 32  }
  0x22   :  { %40 = dma.hbm_to_vmem [thread:$0]  %s3084_s3, 8192, %s2524_s24, [#allocation9], %s2477_s0, %s2477_s0, %s2478_s19  }
  0x23   :  { %2469 = dma.done.wait [#allocation6], 128  }
  0x24   :  { %2470 = vsyncadd [#allocation6], 4294967168 }
  0x25   :  { %2471 = dma.done.wait [#allocation9], 8192  }
  0x26   :  { %2472 = vsyncadd [#allocation9], 4294959104  ;;  %v3088_v0 = vmov 0.0   ;;  %v2480_v1 = vmov 0   ;;  %v60_v2 = vld [vmem:[#allocation8 + $0x8] sm:$0xff]  ;;  %v62_v4 = vld [vmem:[#allocation8 + $0x18] sm:$0xff] }
  0x27   :  { %247 = vmatprep.mubr.f32.mxu0 %v3088_v0  ;;  %318 = vmatprep.mubr.f32.mxu1 %v3088_v0  ;;  %v64_v3 = vld [vmem:[#allocation8 + $0x28] sm:$0xff]  ;;  %v66_v6 = vld [vmem:[#allocation8 + $0x38] sm:$0xff]  ;;  %v59_v7 = vld [vmem:[#allocation8] sm:$0xff]  ;;  %vm364_vm0 = vcmask 7168   ;;  %vm554_vm1 = vcmask 15368   ;;  %vm744_vm2 = vcmask 23568  }
  0x28   :  { %2265 = vset.pattern.permute.xlu0 %v2480_v1  ;;  %v2557_v5 = vpack.c.bf16 %v64_v3, %v60_v2  ;;  %v63_v8 = vld [vmem:[#allocation8 + $0x20] sm:$0xff]  ;;  %v2559_v9 = vpack.c.bf16 %v66_v6, %v62_v4  ;;  %v61_v11 = vld [vmem:[#allocation8 + $0x10] sm:$0xff]  ;;  %v68_v13 = vld [vmem:[#allocation8 + $0x48] sm:$0xff]  ;;  %vm934_vm3 = vcmask 31768   ;;  %vm1124_vm4 = vcmask 39968  }
  0x29   :  { %v2561_v10 = vpack.c.bf16 %v63_v8, %v59_v7  ;;  %v65_v12 = vld [vmem:[#allocation8 + $0x30] sm:$0xff]  ;;  %v72_v15 = vld [vmem:[#allocation8 + $0x68] sm:$0xff]  ;;  %v70_v16 = vld [vmem:[#allocation8 + $0x58] sm:$0xff]  ;;  %vm1314_vm5 = vcmask 48168   ;;  %vm1504_vm6 = vcmask 56368   ;;  %vm1694_vm7 = vcmask 64568  }
  0x2a   :  { %1740 = vmatprep.subr.bf16.mxu0 %v2557_v5  ;;  %v2564_v14 = vpack.c.bf16 %v65_v12, %v61_v11  ;;  %v74_v17 = vld [vmem:[#allocation8 + $0x78] sm:$0xff]  ;;  %1772 = vmatprep.subr.bf16.mxu1 %v2559_v9  ;;  %v2568_v18 = vpack.c.bf16 %v72_v15, %v68_v13  ;;  %v67_v20 = vld [vmem:[#allocation8 + $0x40] sm:$0xff]  ;;  %v69_v22 = vld [vmem:[#allocation8 + $0x50] sm:$0xff] }
  0x2b   :  { %1742 = vmatpush1.bf16.msra.mxu0 %v2561_v10  ;;  %v2570_v19 = vpack.c.bf16 %v74_v17, %v70_v16  ;;  %v71_v21 = vld [vmem:[#allocation8 + $0x60] sm:$0xff]  ;;  %v73_v24 = vld [vmem:[#allocation8 + $0x70] sm:$0xff]  ;;  %v76_v25 = vld [vmem:[#allocation8 + $0x88] sm:$0xff] }
  0x2c   :  { %1774 = vmatpush1.bf16.msra.mxu1 %v2564_v14  ;;  %v2573_v23 = vpack.c.bf16 %v71_v21, %v67_v20  ;;  %v80_v26 = vld [vmem:[#allocation8 + $0xa8] sm:$0xff]  ;;  %1744 = vmatprep.subr.bf16.mxu0 %v2568_v18  ;;  %v2577_v27 = vpack.c.bf16 %v73_v24, %v69_v22  ;;  %v78_v29 = vld [vmem:[#allocation8 + $0x98] sm:$0xff]  ;;  %v75_v31 = vld [vmem:[#allocation8 + $0x80] sm:$0xff] }
  0x2d   :  { %1776 = vmatprep.subr.bf16.mxu1 %v2570_v19  ;;  %v2579_v28 = vpack.c.bf16 %v80_v26, %v76_v25  ;;  %v82_v30 = vld [vmem:[#allocation8 + $0xb8] sm:$0xff]  ;;  %v79_v33 = vld [vmem:[#allocation8 + $0xa0] sm:$0xff]  ;;  %v77_v34 = vld [vmem:[#allocation8 + $0x90] sm:$0xff] }
  0x2e   :  { %v2581_v32 = vpack.c.bf16 %v82_v30, %v78_v29  ;;  %v81_v35 = vld [vmem:[#allocation8 + $0xb0] sm:$0xff]  ;;  %v2584_v36 = vpack.c.bf16 %v79_v33, %v75_v31  ;;  %v84_v37 = vld [vmem:[#allocation8 + $0xc8] sm:$0xff]  ;;  %v86_v39 = vld [vmem:[#allocation8 + $0xd8] sm:$0xff] }
  0x2f   :  { %1746 = vmatpush1.bf16.msra.mxu0 %v2573_v23  ;;  %v88_v38 = vld [vmem:[#allocation8 + $0xe8] sm:$0xff]  ;;  %v2588_v40 = vpack.c.bf16 %v81_v35, %v77_v34  ;;  %v90_v42 = vld [vmem:[#allocation8 + $0xf8] sm:$0xff]  ;;  %v83_v43 = vld [vmem:[#allocation8 + $0xc0] sm:$0xff] }
  0x30   :  { %1778 = vmatpush1.bf16.msra.mxu1 %v2577_v27  ;;  %1748 = vmatprep.subr.bf16.mxu0 %v2579_v28  ;;  %v2590_v41 = vpack.c.bf16 %v88_v38, %v84_v37  ;;  %v87_v44 = vld [vmem:[#allocation8 + $0xe0] sm:$0xff]  ;;  %v2593_v45 = vpack.c.bf16 %v90_v42, %v86_v39  ;;  %v85_v46 = vld [vmem:[#allocation8 + $0xd0] sm:$0xff]  ;;  %v92_v48 = vld [vmem:[#allocation8 + $0x108] sm:$0xff]  ;;  %v2481_v37 = vmov 2  }
  0x31   :  { %1780 = vmatprep.subr.bf16.mxu1 %v2581_v32  ;;  %v89_v47 = vld [vmem:[#allocation8 + $0xf0] sm:$0xff]  ;;  %v96_v49 = vld [vmem:[#allocation8 + $0x128] sm:$0xff]  ;;  %v94_v50 = vld [vmem:[#allocation8 + $0x118] sm:$0xff]  ;;  %v2596_v52 = vpack.c.bf16 %v87_v44, %v83_v43  ;;  %2267 = vset.pattern.permute.xlu1 %v2481_v37 }
  0x32   :  { %v98_v51 = vld [vmem:[#allocation8 + $0x138] sm:$0xff]  ;;  %v2600_v53 = vpack.c.bf16 %v89_v47, %v85_v46  ;;  %v2602_v54 = vpack.c.bf16 %v96_v49, %v92_v48  ;;  %v91_v55 = vld [vmem:[#allocation8 + $0x100] sm:$0xff]  ;;  %v93_v57 = vld [vmem:[#allocation8 + $0x110] sm:$0xff] }
  0x33   :  { %1750 = vmatpush1.bf16.msra.mxu0 %v2584_v36  ;;  %v95_v56 = vld [vmem:[#allocation8 + $0x120] sm:$0xff]  ;;  %v2605_v58 = vpack.c.bf16 %v98_v51, %v94_v50  ;;  %v97_v59 = vld [vmem:[#allocation8 + $0x130] sm:$0xff]  ;;  %v100_v60 = vld [vmem:[#allocation8 + $0x148] sm:$0xff]  ;;  %v2482_v51 = vmov 3  }
  0x34   :  { %1782 = vmatpush1.bf16.msra.mxu1 %v2588_v40  ;;  %1752 = vmatprep.subr.bf16.mxu0 %v2590_v41  ;;  %v104_v61 = vld [vmem:[#allocation8 + $0x168] sm:$0xff]  ;;  %v102_v62 = vld [vmem:[#allocation8 + $0x158] sm:$0xff]  ;;  %v2608_v1 = vpack.c.bf16 %v95_v56, %v91_v55  ;;  %v2612_v2 = vpack.c.bf16 %v97_v59, %v93_v57  ;;  %v99_v4 = vld [vmem:[#allocation8 + $0x140] sm:$0xff]  ;;  %v2483_v55 = vmov 4   ;;  %v2484_v56 = vmov 6  }
  0x35   :  { %1784 = vmatprep.subr.bf16.mxu1 %v2593_v45  ;;  %v106_v63 = vld [vmem:[#allocation8 + $0x178] sm:$0xff]  ;;  %v2614_v3 = vpack.c.bf16 %v104_v61, %v100_v60  ;;  %v103_v6 = vld [vmem:[#allocation8 + $0x160] sm:$0xff]  ;;  %v101_v7 = vld [vmem:[#allocation8 + $0x150] sm:$0xff]  ;;  %v2485_v57 = vmov 1   ;;  %v134_v59 = vlaneseq }
  0x36   :  { %v2617_v8 = vpack.c.bf16 %v106_v63, %v102_v62  ;;  %v105_v11 = vld [vmem:[#allocation8 + $0x170] sm:$0xff]  ;;  %v108_v12 = vld [vmem:[#allocation8 + $0x188] sm:$0xff]  ;;  %v110_v15 = vld [vmem:[#allocation8 + $0x198] sm:$0xff]  ;;  %v2620_v17 = vpack.c.bf16 %v103_v6, %v99_v4 }
  0x37   :  { %1754 = vmatpush1.bf16.msra.mxu0 %v2596_v52  ;;  %v112_v13 = vld [vmem:[#allocation8 + $0x1a8] sm:$0xff]  ;;  %v114_v16 = vld [vmem:[#allocation8 + $0x1b8] sm:$0xff]  ;;  %v107_v20 = vld [vmem:[#allocation8 + $0x180] sm:$0xff]  ;;  %v2624_v21 = vpack.c.bf16 %v105_v11, %v101_v7  ;;  %v135_v60 = vshrl.u32 %v134_v59, 7 }
  0x38   :  { %1786 = vmatpush1.bf16.msra.mxu1 %v2600_v53  ;;  %1756 = vmatprep.subr.bf16.mxu0 %v2602_v54  ;;  %v2626_v22 = vpack.c.bf16 %v112_v13, %v108_v12  ;;  %v111_v24 = vld [vmem:[#allocation8 + $0x1a0] sm:$0xff]  ;;  %v109_v25 = vld [vmem:[#allocation8 + $0x190] sm:$0xff]  ;;  %v2628_v26 = vld [vmem:[#allocation5] sm:$0xff]  ;;  %v2631_v29 = vpack.c.bf16 %v114_v16, %v110_v15 }
  0x39   :  { %1788 = vmatprep.subr.bf16.mxu1 %v2605_v58  ;;  %v113_v30 = vld [vmem:[#allocation8 + $0x1b0] sm:$0xff]  ;;  %v116_v31 = vld [vmem:[#allocation8 + $0x1c8] sm:$0xff]  ;;  %130 = vperm.xlu0 %2265, %v2628_v26   ;;  %v118_v34 = vld [vmem:[#allocation8 + $0x1d8] sm:$0xff]  ;;  %v2635_v38 = vpack.c.bf16 %v111_v24, %v107_v20  ;;  %v136_v61 = vsub.s32 0, %v135_v60  ;;  %v140_v63 = vsub.s32 1, %v135_v60  ;;  %v148_v12 = vsub.s32 3, %v135_v60 }
  0x3a   :  { %v120_v33 = vld [vmem:[#allocation8 + $0x1e8] sm:$0xff]  ;;  %v122_v35 = vld [vmem:[#allocation8 + $0x1f8] sm:$0xff]  ;;  %559 = vperm.xlu1 %2267, %v2628_v26   ;;  %v2640_v39 = vpack.c.bf16 %v113_v30, %v109_v25  ;;  %v115_v43 = vld [vmem:[#allocation8 + $0x1c0] sm:$0xff]  ;;  %v144_v30 = vsub.s32 2, %v135_v60 }
  0x3b   :  { %1758 = vmatpush1.bf16.msra.mxu0 %v2608_v1  ;;  %v2642_v42 = vpack.c.bf16 %v120_v33, %v116_v31  ;;  %v119_v44 = vld [vmem:[#allocation8 + $0x1e0] sm:$0xff]  ;;  %v2645_v46 = vpack.c.bf16 %v122_v35, %v118_v34  ;;  %v117_v47 = vld [vmem:[#allocation8 + $0x1d0] sm:$0xff]  ;;  %v57_v62 = vld [vmem:[%s3082_s1] sm:$0xf] }
  0x3c   :  { %1790 = vmatpush1.bf16.msra.mxu1 %v2612_v2  ;;  %1760 = vmatprep.subr.bf16.mxu0 %v2614_v3  ;;  %v121_v48 = vld [vmem:[#allocation8 + $0x1f0] sm:$0xff]  ;;  %v2648_v49 = vpack.c.bf16 %v119_v44, %v115_v43  ;;  %v2702_v4 = vrot.slane %v57_v62, %v136_v61  ;;  %v58_v7 = vld [vmem:[%s3083_s2] sm:$0xf]  ;;  %v2707_v11 = vrot.slane %v57_v62, %v140_v63 }
  0x3d   :  { %1792 = vmatprep.subr.bf16.mxu1 %v2617_v8  ;;  %v2652_v50 = vpack.c.bf16 %v121_v48, %v117_v47  ;;  %2266 = vset.pattern.permute.xlu0 %v2485_v57  ;;  %v2710_v15 = vrot.slane %v58_v7, %v136_v61  ;;  %v2713_v20 = vrot.slane %v58_v7, %v140_v63 }
  0x3e   :  { %2268 = vset.pattern.permute.xlu1 %v2482_v51  ;;  %369 = vperm.xlu0 %2266, %v2628_v26   ;;  %v2715_v24 = vrot.slane %v57_v62, %v148_v12  ;;  %v2720_v35 = vrot.slane %v58_v7, %v148_v12  ;;  %v2722_v43 = vrot.slane %v57_v62, %v144_v30 }
  0x3f   :  { %1762 = vmatpush1.bf16.msra.mxu0 %v2620_v17  ;;  %749 = vperm.xlu1 %2268, %v2628_v26   ;;  %v2726_v60 = vrot.slane %v58_v7, %v144_v30 }
  0x40   :  { %1794 = vmatpush1.bf16.msra.mxu1 %v2624_v21  ;;  %1764 = vmatprep.subr.bf16.mxu0 %v2626_v22  ;;  %3096 = vst [vmem:[#allocation14_spill] sm:$0xff] %v2715_v24 }
  0x41   :  { %1796 = vmatprep.subr.bf16.mxu1 %v2631_v29 }
  0x43   :  { %1766 = vmatpush1.bf16.msra.mxu0 %v2635_v38  ;;  %2269 = vset.pattern.permute.xlu1 %v2483_v55 }
  0x44   :  { %1798 = vmatpush1.bf16.msra.mxu1 %v2640_v39  ;;  %1768 = vmatprep.subr.bf16.mxu0 %v2642_v42 }
  0x45   :  { %1800 = vmatprep.subr.bf16.mxu1 %v2645_v46  ;;  %939 = vperm.xlu1 %2269, %v2628_v26  }
  0x47   :  { %1770 = vmatpush1.bf16.msra.mxu0 %v2648_v49 }
  0x48   :  { %1802 = vmatpush1.bf16.msra.mxu1 %v2652_v50  ;;  %1804 = vmatprep.subr.bf16.mxu0 %v2557_v5 }
  0x49   :  { %1836 = vmatprep.subr.bf16.mxu1 %v2559_v9  ;;  %2271 = vset.pattern.permute.xlu1 %v2484_v56 }
  0x4a   :  { %248 = vmatmul.mubr.f32.vlgmr.msra.gmra.mrb[0].mxu0 %v3088_v0  ;;  %1319 = vperm.xlu1 %2271, %v2628_v26  }
  0x4b   :  { %319 = vmatmul.mubr.f32.vlgmr.msra.gmra.mrb[0].mxu1 %v3088_v0  ;;  %1806 = vmatpush1.bf16.msra.mxu0 %v2561_v10 }
  0x4c   :  { %1838 = vmatpush1.bf16.msra.mxu1 %v2564_v14  ;;  %1808 = vmatprep.subr.bf16.mxu0 %v2568_v18 }
  0x4d   :  { %1840 = vmatprep.subr.bf16.mxu1 %v2570_v19  ;;  %444 = vmatprep.mubr.f32.mxu0 %v3088_v0 }
  0x4e   :  { %515 = vmatprep.mubr.f32.mxu1 %v3088_v0 }
  0x4f   :  { %1810 = vmatpush1.bf16.msra.mxu0 %v2573_v23 }
  0x50   :  { %1842 = vmatpush1.bf16.msra.mxu1 %v2577_v27  ;;  %1812 = vmatprep.subr.bf16.mxu0 %v2579_v28 }
  0x51   :  { %1844 = vmatprep.subr.bf16.mxu1 %v2581_v32 }
  0x53   :  { %1814 = vmatpush1.bf16.msra.mxu0 %v2584_v36 }
  0x54   :  { %1846 = vmatpush1.bf16.msra.mxu1 %v2588_v40  ;;  %1816 = vmatprep.subr.bf16.mxu0 %v2590_v41 }
  0x55   :  { %1848 = vmatprep.subr.bf16.mxu1 %v2593_v45 }
  0x57   :  { %1818 = vmatpush1.bf16.msra.mxu0 %v2596_v52 }
  0x58   :  { %1850 = vmatpush1.bf16.msra.mxu1 %v2600_v53  ;;  %1820 = vmatprep.subr.bf16.mxu0 %v2602_v54 }
  0x59   :  { %1852 = vmatprep.subr.bf16.mxu1 %v2605_v58 }
  0x5b   :  { %1822 = vmatpush1.bf16.msra.mxu0 %v2608_v1 }
  0x5c   :  { %1854 = vmatpush1.bf16.msra.mxu1 %v2612_v2  ;;  %1824 = vmatprep.subr.bf16.mxu0 %v2614_v3 }
  0x5d   :  { %1856 = vmatprep.subr.bf16.mxu1 %v2617_v8 }
  0x5f   :  { %1826 = vmatpush1.bf16.msra.mxu0 %v2620_v17 }
  0x60   :  { %1858 = vmatpush1.bf16.msra.mxu1 %v2624_v21  ;;  %1828 = vmatprep.subr.bf16.mxu0 %v2626_v22 }
  0x61   :  { %1860 = vmatprep.subr.bf16.mxu1 %v2631_v29 }
  0x63   :  { %1830 = vmatpush1.bf16.msra.mxu0 %v2635_v38 }
  0x64   :  { %1862 = vmatpush1.bf16.msra.mxu1 %v2640_v39  ;;  %1832 = vmatprep.subr.bf16.mxu0 %v2642_v42 }
  0x65   :  { %1864 = vmatprep.subr.bf16.mxu1 %v2645_v46 }
  0x67   :  { %1834 = vmatpush1.bf16.msra.mxu0 %v2648_v49 }
  0x68   :  { %1866 = vmatpush1.bf16.msra.mxu1 %v2652_v50  ;;  %1868 = vmatprep.subr.bf16.mxu0 %v2557_v5 }
  0x69   :  { %1900 = vmatprep.subr.bf16.mxu1 %v2559_v9 }
  0xb8   :  { %v131_v6 = vpop.permute.xlu0 %130 }
  0xb9   :  { %v154_v13 = vmul.f32 %v2702_v4, %v131_v6  ;;  %v155_v16 = vmul.f32 %v2707_v11, %v131_v6  ;;  %v157_v34 = vmul.f32 %v2715_v24, %v131_v6  ;;  %v156_v59 = vmul.f32 %v2722_v43, %v131_v6 }
  0xbb   :  { %v179_v25 = vadd.f32 %v2710_v15, %v154_v13  ;;  %v180_v31 = vadd.f32 %v2713_v20, %v155_v16  ;;  %v182_v57 = vadd.f32 %v2720_v35, %v157_v34  ;;  %v181_v63 = vadd.f32 %v2726_v60, %v156_v59 }
  0xbc   :  { %v2486_v59 = vmov 5  }
  0xbd   :  { %2270 = vset.pattern.permute.xlu0 %v2486_v59 }
  0xbe   :  { %1129 = vperm.xlu0 %2270, %v2628_v26  }
 0x11d   :  { %v249_v33 = vpop.f32.mrb[0].mxu0 }
 0x11e   :  { %v325_v37 = vadd.f32 %v249_v33, %v179_v25  ;;  %v320_v44 = vpop.f32.mrb[0].mxu1  ;;  %v251_v47 = vpop.f32.mrb[1].mxu0 }
 0x11f   :  { %v326_v48 = vadd.f32 %v251_v47, %v180_v31  ;;  %v322_v51 = vpop.f32.mrb[1].mxu1  ;;  %v327_v62 = vadd.f32 %v320_v44, %v181_v63 }
 0x120   :  { %v1714_v55 = vmul.f32 -1.442695, %v325_v37  ;;  %v328_v61 = vadd.f32 %v322_v51, %v182_v57 }
 0x121   :  { %v1715_v56 = vmul.f32 -1.442695, %v326_v48 }
 0x122   :  { %2274 = vpow2.f32 %v1714_v55  ;;  %v1716_v12 = vmul.f32 -1.442695, %v328_v61  ;;  %v2735_v55 = vld [vmem:[%s3085_s4] ss:$0 sm:$0xff]  ;;  %v2773_v61 = vpop.permute.xlu1 %559 }
 0x123   :  { %2276 = vpow2.f32 %v1715_v56 }
 0x124   :  { %2278 = vpow2.f32 %v1716_v12 }
 0x125   :  { %2280 = vtanh.f32 %v327_v62 }
 0x126   :  { %v2775_v63 = vpop.permute.xlu1 %749 }
 0x127   :  { %3097 = vst [vmem:[#allocation15_spill] sm:$0xff] %v2775_v63 }
 0x12a   :  { %v2777_v12 = vpop.permute.xlu1 %939 }
 0x12b   :  { %3098 = vst [vmem:[#allocation16_spill] sm:$0xff] %v2777_v12 }
 0x12c   :  { %v2275_v13 = vpop.eup %2274 }
 0x12d   :  { %v2277_v16 = vpop.eup %2276  ;;  %v332_v25 = vadd.f32 1.0, %v2275_v13  ;;  %v2784_v13 = vstv %s3086_s5 }
 0x12e   :  { %v338_v31 = vadd.f32 1.0, %v2277_v16  ;;  %v2279_v33 = vpop.eup %2278  ;;  %v2779_v62 = vpop.permute.xlu1 %1319 }
 0x12f   :  { %2282 = vrcp.f32 %v332_v25  ;;  %v2281_v34 = vpop.eup %2280  ;;  %v345_v30 = vadd.f32 1.0, %v2279_v33  ;;  %3099 = vst [vmem:[#allocation17_spill] sm:$0xff] %v2779_v62 }
 0x130   :  { %2284 = vrcp.f32 %v338_v31  ;;  %v370_v31 = vpop.permute.xlu0 %369 }
 0x131   :  { %2286 = vrcp.f32 %v345_v30  ;;  %v372_v26 = vmul.f32 %v370_v31, %v2702_v4  ;;  %v373_v33 = vmul.f32 %v370_v31, %v2707_v11  ;;  %v375_v30 = vmul.f32 %v370_v31, %v2715_v24 }
 0x139   :  { %v2283_v37 = vpop.eup %2282 }
 0x13a   :  { %v2285_v6 = vpop.eup %2284  ;;  %v349_v7 = vmul.f32 %v2283_v37, %v2281_v34  ;;  %v376_v34 = vadd.f32 %v372_v26, %v2710_v15  ;;  %v377_v37 = vadd.f32 %v373_v33, %v2713_v20 }
 0x13b   :  { %v348_v47 = vmul.f32 0.0, %v2285_v6  ;;  %v2287_v44 = vpop.eup %2286 }
 0x13d   :  { %v2729_v48 = vadd.f32 %v349_v7, %v348_v47 }
 0x13f   :  { %2288 = vtanh.f32 %v2729_v48 }
 0x149   :  { %v2289_v51 = vpop.eup %2288 }
 0x14a   :  { %v352_v56 = vmul.f32 %v2289_v51, %v2287_v44 }
 0x14c   :  { %445 = vmatmul.mubr.f32.vlgmr.msra.gmra.mrb[2].mxu0 %v352_v56  ;;  %516 = vmatmul.mubr.f32.vlgmr.msra.gmra.mrb[2].mxu1 %v352_v56  ;;  %v359_v57 = vmul.f32 %v2735_v55, %v352_v56 }
 0x14d   :  { %1870 = vmatpush1.bf16.msra.mxu0 %v2561_v10  ;;  %1902 = vmatpush1.bf16.msra.mxu1 %v2564_v14 }
 0x14e   :  { %360 = vadd.xlane.f32.xlu1 %v359_v57  ;;  %1872 = vmatprep.subr.bf16.mxu0 %v2568_v18 }
 0x14f   :  { %1904 = vmatprep.subr.bf16.mxu1 %v2570_v19  ;;  %634 = vmatprep.mubr.f32.mxu0 %v3088_v0 }
 0x150   :  { %705 = vmatprep.mubr.f32.mxu1 %v3088_v0 }
 0x151   :  { %1874 = vmatpush1.bf16.msra.mxu0 %v2573_v23  ;;  %1906 = vmatpush1.bf16.msra.mxu1 %v2577_v27 }
 0x152   :  { %1876 = vmatprep.subr.bf16.mxu0 %v2579_v28  ;;  %1908 = vmatprep.subr.bf16.mxu1 %v2581_v32 }
 0x155   :  { %1878 = vmatpush1.bf16.msra.mxu0 %v2584_v36  ;;  %1910 = vmatpush1.bf16.msra.mxu1 %v2588_v40 }
 0x156   :  { %1880 = vmatprep.subr.bf16.mxu0 %v2590_v41  ;;  %1912 = vmatprep.subr.bf16.mxu1 %v2593_v45 }
 0x159   :  { %1882 = vmatpush1.bf16.msra.mxu0 %v2596_v52  ;;  %1914 = vmatpush1.bf16.msra.mxu1 %v2600_v53 }
 0x15a   :  { %1884 = vmatprep.subr.bf16.mxu0 %v2602_v54  ;;  %1916 = vmatprep.subr.bf16.mxu1 %v2605_v58 }
 0x15d   :  { %1886 = vmatpush1.bf16.msra.mxu0 %v2608_v1  ;;  %1918 = vmatpush1.bf16.msra.mxu1 %v2612_v2 }
 0x15e   :  { %1888 = vmatprep.subr.bf16.mxu0 %v2614_v3  ;;  %1920 = vmatprep.subr.bf16.mxu1 %v2617_v8 }
 0x161   :  { %1890 = vmatpush1.bf16.msra.mxu0 %v2620_v17  ;;  %1922 = vmatpush1.bf16.msra.mxu1 %v2624_v21 }
 0x162   :  { %1892 = vmatprep.subr.bf16.mxu0 %v2626_v22  ;;  %1924 = vmatprep.subr.bf16.mxu1 %v2631_v29 }
 0x165   :  { %1894 = vmatpush1.bf16.msra.mxu0 %v2635_v38  ;;  %1926 = vmatpush1.bf16.msra.mxu1 %v2640_v39 }
 0x166   :  { %1896 = vmatprep.subr.bf16.mxu0 %v2642_v42  ;;  %1928 = vmatprep.subr.bf16.mxu1 %v2645_v46 }
 0x169   :  { %1898 = vmatpush1.bf16.msra.mxu0 %v2648_v49  ;;  %1930 = vmatpush1.bf16.msra.mxu1 %v2652_v50 }
 0x16a   :  { %1932 = vmatprep.subr.bf16.mxu0 %v2557_v5  ;;  %1964 = vmatprep.subr.bf16.mxu1 %v2559_v9 }
 0x1db   :  { %v361_v16 = vpop.xlane.xlu1 %360 }
 0x1dc   :  { %v363_v25 = vadd.f32 %v2784_v13, %v361_v16  ;;  %v379_v16 = vadd.f32 %v375_v30, %v2720_v35 }
 0x1de   :  { %365 = vst.msk [vmem:[#allocation10] sm:$0xff] %vm364_vm0, %v363_v25  ;;  %v374_v25 = vmul.f32 %v370_v31, %v2722_v43 }
 0x1e0   :  { %v378_v26 = vadd.f32 %v374_v25, %v2726_v60 }
 0x21f   :  { %v446_v6 = vpop.f32.mrb[2].mxu0  ;;  %v517_v7 = vpop.f32.mrb[2].mxu1 }
 0x220   :  { %v522_v47 = vadd.f32 %v446_v6, %v376_v34  ;;  %v448_v44 = vpop.f32.mrb[3].mxu0  ;;  %v519_v51 = vpop.f32.mrb[3].mxu1  ;;  %v524_v62 = vadd.f32 %v517_v7, %v378_v26 }
 0x221   :  { %v523_v56 = vadd.f32 %v448_v44, %v377_v37  ;;  %v525_v0 = vadd.f32 %v519_v51, %v379_v16  ;;  %v563_v16 = vmul.f32 %v2773_v61, %v2707_v11 }
 0x222   :  { %v1718_v57 = vmul.f32 -1.442695, %v522_v47 }
 0x223   :  { %v1719_v59 = vmul.f32 -1.442695, %v523_v56  ;;  %v1720_v33 = vmul.f32 -1.442695, %v525_v0  ;;  %v567_v26 = vadd.f32 %v563_v16, %v2713_v20 }
 0x224   :  { %2290 = vpow2.f32 %v1718_v57 }
 0x225   :  { %2292 = vpow2.f32 %v1719_v59  ;;  %v562_v59 = vmul.f32 %v2773_v61, %v2702_v4 }
 0x226   :  { %2294 = vpow2.f32 %v1720_v33 }
 0x227   :  { %2296 = vtanh.f32 %v524_v62  ;;  %v566_v25 = vadd.f32 %v562_v59, %v2710_v15 }
 0x22e   :  { %v2291_v12 = vpop.eup %2290 }
 0x22f   :  { %v2293_v63 = vpop.eup %2292  ;;  %v529_v24 = vadd.f32 1.0, %v2291_v12 }
 0x230   :  { %v535_v34 = vadd.f32 1.0, %v2293_v63  ;;  %v2295_v37 = vpop.eup %2294  ;;  %v2834_v63 = vpop.permute.xlu0 %1129 }
 0x231   :  { %2298 = vrcp.f32 %v529_v24  ;;  %v2297_v6 = vpop.eup %2296  ;;  %v542_v31 = vadd.f32 1.0, %v2295_v37  ;;  %3101 = vst [vmem:[#allocation18_spill] sm:$0xff] %v2834_v63  ;;  %v3102_v37 = vld [vmem:[#allocation14_spill] sm:$0xff] }
 0x232   :  { %2300 = vrcp.f32 %v535_v34 }
 0x233   :  { %2302 = vrcp.f32 %v542_v31 }
 0x23b   :  { %v2299_v30 = vpop.eup %2298 }
 0x23c   :  { %v2301_v47 = vpop.eup %2300  ;;  %v546_v44 = vmul.f32 %v2299_v30, %v2297_v6  ;;  %v565_v6 = vmul.f32 %v2773_v61, %v3102_v37 }
 0x23d   :  { %v545_v51 = vmul.f32 %v2301_v47, %v2729_v48  ;;  %v2303_v0 = vpop.eup %2302  ;;  %v3100_v48 = vmov 0.0  }
 0x23f   :  { %v2796_v56 = vadd.f32 %v546_v44, %v545_v51 }
 0x241   :  { %2304 = vtanh.f32 %v2796_v56 }
 0x24b   :  { %v2305_v12 = vpop.eup %2304 }
 0x24c   :  { %v549_v7 = vmul.f32 %v2305_v12, %v2303_v0  ;;  %v569_v12 = vadd.f32 %v565_v6, %v2720_v35 }
 0x24e   :  { %635 = vmatmul.mubr.f32.vlgmr.msra.gmra.mrb[4].mxu0 %v549_v7  ;;  %706 = vmatmul.mubr.f32.vlgmr.msra.gmra.mrb[4].mxu1 %v549_v7  ;;  %v550_v24 = vmul.f32 %v2735_v55, %v549_v7  ;;  %v564_v7 = vmul.f32 %v2773_v61, %v2722_v43 }
 0x24f   :  { %1934 = vmatpush1.bf16.msra.mxu0 %v2561_v10  ;;  %1966 = vmatpush1.bf16.msra.mxu1 %v2564_v14 }
 0x250   :  { %551 = vadd.xlane.f32.xlu0 %v550_v24  ;;  %1936 = vmatprep.subr.bf16.mxu0 %v2568_v18 }
 0x251   :  { %1968 = vmatprep.subr.bf16.mxu1 %v2570_v19  ;;  %824 = vmatprep.mubr.f32.mxu0 %v3100_v48 }
 0x252   :  { %895 = vmatprep.mubr.f32.mxu1 %v3100_v48 }
 0x253   :  { %1938 = vmatpush1.bf16.msra.mxu0 %v2573_v23  ;;  %1970 = vmatpush1.bf16.msra.mxu1 %v2577_v27 }
 0x254   :  { %1940 = vmatprep.subr.bf16.mxu0 %v2579_v28  ;;  %1972 = vmatprep.subr.bf16.mxu1 %v2581_v32 }
 0x257   :  { %1942 = vmatpush1.bf16.msra.mxu0 %v2584_v36  ;;  %1974 = vmatpush1.bf16.msra.mxu1 %v2588_v40 }
 0x258   :  { %1944 = vmatprep.subr.bf16.mxu0 %v2590_v41  ;;  %1976 = vmatprep.subr.bf16.mxu1 %v2593_v45 }
 0x25b   :  { %1946 = vmatpush1.bf16.msra.mxu0 %v2596_v52  ;;  %1978 = vmatpush1.bf16.msra.mxu1 %v2600_v53 }
 0x25c   :  { %1948 = vmatprep.subr.bf16.mxu0 %v2602_v54  ;;  %1980 = vmatprep.subr.bf16.mxu1 %v2605_v58 }
 0x25f   :  { %1950 = vmatpush1.bf16.msra.mxu0 %v2608_v1  ;;  %1982 = vmatpush1.bf16.msra.mxu1 %v2612_v2 }
 0x260   :  { %1952 = vmatprep.subr.bf16.mxu0 %v2614_v3  ;;  %1984 = vmatprep.subr.bf16.mxu1 %v2617_v8 }
 0x263   :  { %1954 = vmatpush1.bf16.msra.mxu0 %v2620_v17  ;;  %1986 = vmatpush1.bf16.msra.mxu1 %v2624_v21 }
 0x264   :  { %1956 = vmatprep.subr.bf16.mxu0 %v2626_v22  ;;  %1988 = vmatprep.subr.bf16.mxu1 %v2631_v29 }
 0x267   :  { %1958 = vmatpush1.bf16.msra.mxu0 %v2635_v38  ;;  %1990 = vmatpush1.bf16.msra.mxu1 %v2640_v39 }
 0x268   :  { %1960 = vmatprep.subr.bf16.mxu0 %v2642_v42  ;;  %1992 = vmatprep.subr.bf16.mxu1 %v2645_v46 }
 0x26b   :  { %1962 = vmatpush1.bf16.msra.mxu0 %v2648_v49  ;;  %1994 = vmatpush1.bf16.msra.mxu1 %v2652_v50 }
 0x26c   :  { %1996 = vmatprep.subr.bf16.mxu0 %v2557_v5  ;;  %2028 = vmatprep.subr.bf16.mxu1 %v2559_v9 }
 0x2dd   :  { %v552_v62 = vpop.xlane.xlu0 %551 }
 0x2de   :  { %v553_v57 = vadd.f32 %v552_v62, %v2784_v13  ;;  %v568_v62 = vadd.f32 %v564_v7, %v2726_v60 }
 0x2e0   :  { %555 = vst.msk [vmem:[#allocation10] sm:$0xff] %vm554_vm1, %v553_v57 }
 0x321   :  { %v636_v33 = vpop.f32.mrb[4].mxu0  ;;  %v707_v34 = vpop.f32.mrb[4].mxu1 }
 0x322   :  { %v712_v30 = vadd.f32 %v636_v33, %v566_v25  ;;  %v638_v47 = vpop.f32.mrb[5].mxu0  ;;  %v709_v44 = vpop.f32.mrb[5].mxu1  ;;  %v714_v59 = vadd.f32 %v707_v34, %v568_v62 }
 0x323   :  { %v713_v31 = vadd.f32 %v638_v47, %v567_v26  ;;  %v715_v24 = vadd.f32 %v709_v44, %v569_v12 }
 0x324   :  { %v1721_v51 = vmul.f32 -1.442695, %v712_v30 }
 0x325   :  { %v1722_v0 = vmul.f32 -1.442695, %v713_v31  ;;  %v1723_v57 = vmul.f32 -1.442695, %v715_v24  ;;  %v3103_v24 = vld [vmem:[#allocation15_spill] sm:$0xff] }
 0x326   :  { %2306 = vpow2.f32 %v1721_v51  ;;  %v752_v62 = vmul.f32 %v3103_v24, %v2702_v4 }
 0x327   :  { %2308 = vpow2.f32 %v1722_v0 }
 0x328   :  { %2310 = vpow2.f32 %v1723_v57  ;;  %v753_v57 = vmul.f32 %v3103_v24, %v2707_v11 }
 0x329   :  { %2312 = vtanh.f32 %v714_v59  ;;  %v756_v59 = vadd.f32 %v752_v62, %v2710_v15 }
 0x330   :  { %v2307_v16 = vpop.eup %2306 }
 0x331   :  { %v2309_v63 = vpop.eup %2308  ;;  %v719_v25 = vadd.f32 1.0, %v2307_v16  ;;  %v757_v16 = vadd.f32 %v753_v57, %v2713_v20 }
 0x332   :  { %v725_v26 = vadd.f32 1.0, %v2309_v63  ;;  %v2311_v33 = vpop.eup %2310 }
 0x333   :  { %2314 = vrcp.f32 %v719_v25  ;;  %v2313_v6 = vpop.eup %2312  ;;  %v732_v61 = vadd.f32 1.0, %v2311_v33  ;;  %v755_v33 = vmul.f32 %v3103_v24, %v3102_v37 }
 0x334   :  { %2316 = vrcp.f32 %v725_v26 }
 0x335   :  { %2318 = vrcp.f32 %v732_v61 }
 0x33d   :  { %v2315_v30 = vpop.eup %2314 }
 0x33e   :  { %v2317_v47 = vpop.eup %2316  ;;  %v736_v31 = vmul.f32 %v2315_v30, %v2313_v6 }
 0x33f   :  { %v735_v44 = vmul.f32 %v2317_v47, %v2796_v56  ;;  %v2319_v34 = vpop.eup %2318 }
 0x341   :  { %v2850_v51 = vadd.f32 %v736_v31, %v735_v44 }
 0x343   :  { %2320 = vtanh.f32 %v2850_v51 }
 0x34d   :  { %v2321_v0 = vpop.eup %2320 }
 0x34e   :  { %v739_v12 = vmul.f32 %v2321_v0, %v2319_v34  ;;  %v759_v34 = vadd.f32 %v755_v33, %v2720_v35  ;;  %v754_v0 = vmul.f32 %v3103_v24, %v2722_v43 }
 0x350   :  { %825 = vmatmul.mubr.f32.vlgmr.msra.gmra.mrb[6].mxu0 %v739_v12  ;;  %896 = vmatmul.mubr.f32.vlgmr.msra.gmra.mrb[6].mxu1 %v739_v12  ;;  %v740_v63 = vmul.f32 %v2735_v55, %v739_v12 }
 0x351   :  { %1998 = vmatpush1.bf16.msra.mxu0 %v2561_v10  ;;  %2030 = vmatpush1.bf16.msra.mxu1 %v2564_v14 }
 0x352   :  { %741 = vadd.xlane.f32.xlu0 %v740_v63  ;;  %2000 = vmatprep.subr.bf16.mxu0 %v2568_v18  ;;  %v758_v63 = vadd.f32 %v754_v0, %v2726_v60 }
 0x353   :  { %2032 = vmatprep.subr.bf16.mxu1 %v2570_v19  ;;  %1014 = vmatprep.mubr.f32.mxu0 %v3100_v48 }
 0x354   :  { %1085 = vmatprep.mubr.f32.mxu1 %v3100_v48 }
 0x355   :  { %2002 = vmatpush1.bf16.msra.mxu0 %v2573_v23  ;;  %2034 = vmatpush1.bf16.msra.mxu1 %v2577_v27 }
 0x356   :  { %2004 = vmatprep.subr.bf16.mxu0 %v2579_v28  ;;  %2036 = vmatprep.subr.bf16.mxu1 %v2581_v32 }
 0x359   :  { %2006 = vmatpush1.bf16.msra.mxu0 %v2584_v36  ;;  %2038 = vmatpush1.bf16.msra.mxu1 %v2588_v40 }
 0x35a   :  { %2008 = vmatprep.subr.bf16.mxu0 %v2590_v41  ;;  %2040 = vmatprep.subr.bf16.mxu1 %v2593_v45 }
 0x35d   :  { %2010 = vmatpush1.bf16.msra.mxu0 %v2596_v52  ;;  %2042 = vmatpush1.bf16.msra.mxu1 %v2600_v53 }
 0x35e   :  { %2012 = vmatprep.subr.bf16.mxu0 %v2602_v54  ;;  %2044 = vmatprep.subr.bf16.mxu1 %v2605_v58 }
 0x361   :  { %2014 = vmatpush1.bf16.msra.mxu0 %v2608_v1  ;;  %2046 = vmatpush1.bf16.msra.mxu1 %v2612_v2 }
 0x362   :  { %2016 = vmatprep.subr.bf16.mxu0 %v2614_v3  ;;  %2048 = vmatprep.subr.bf16.mxu1 %v2617_v8 }
 0x365   :  { %2018 = vmatpush1.bf16.msra.mxu0 %v2620_v17  ;;  %2050 = vmatpush1.bf16.msra.mxu1 %v2624_v21 }
 0x366   :  { %2020 = vmatprep.subr.bf16.mxu0 %v2626_v22  ;;  %2052 = vmatprep.subr.bf16.mxu1 %v2631_v29 }
 0x369   :  { %2022 = vmatpush1.bf16.msra.mxu0 %v2635_v38  ;;  %2054 = vmatpush1.bf16.msra.mxu1 %v2640_v39 }
 0x36a   :  { %2024 = vmatprep.subr.bf16.mxu0 %v2642_v42  ;;  %2056 = vmatprep.subr.bf16.mxu1 %v2645_v46 }
 0x36d   :  { %2026 = vmatpush1.bf16.msra.mxu0 %v2648_v49  ;;  %2058 = vmatpush1.bf16.msra.mxu1 %v2652_v50 }
 0x36e   :  { %2060 = vmatprep.subr.bf16.mxu0 %v2557_v5  ;;  %2092 = vmatprep.subr.bf16.mxu1 %v2559_v9 }
 0x3df   :  { %v742_v56 = vpop.xlane.xlu0 %741 }
 0x3e0   :  { %v743_v7 = vadd.f32 %v742_v56, %v2784_v13 }
 0x3e2   :  { %745 = vst.msk [vmem:[#allocation10] sm:$0xff] %vm744_vm2, %v743_v7 }
 0x423   :  { %v826_v25 = vpop.f32.mrb[6].mxu0  ;;  %v897_v26 = vpop.f32.mrb[6].mxu1 }
 0x424   :  { %v902_v6 = vadd.f32 %v826_v25, %v756_v59  ;;  %v828_v30 = vpop.f32.mrb[7].mxu0  ;;  %v899_v47 = vpop.f32.mrb[7].mxu1  ;;  %v904_v7 = vadd.f32 %v897_v26, %v758_v63  ;;  %v3104_v63 = vld [vmem:[#allocation16_spill] sm:$0xff] }
 0x425   :  { %v903_v31 = vadd.f32 %v828_v30, %v757_v16  ;;  %v905_v12 = vadd.f32 %v899_v47, %v759_v34 }
 0x426   :  { %v1724_v61 = vmul.f32 -1.442695, %v902_v6 }
 0x427   :  { %v1725_v44 = vmul.f32 -1.442695, %v903_v31  ;;  %v1726_v56 = vmul.f32 -1.442695, %v905_v12 }
 0x428   :  { %2322 = vpow2.f32 %v1724_v61 }
 0x429   :  { %2324 = vpow2.f32 %v1725_v44 }
 0x42a   :  { %2326 = vpow2.f32 %v1726_v56  ;;  %v942_v56 = vmul.f32 %v3104_v63, %v2702_v4 }
 0x42b   :  { %2328 = vtanh.f32 %v904_v7  ;;  %v943_v7 = vmul.f32 %v3104_v63, %v2707_v11 }
 0x432   :  { %v2323_v62 = vpop.eup %2322 }
 0x433   :  { %v2325_v57 = vpop.eup %2324  ;;  %v909_v59 = vadd.f32 1.0, %v2323_v62  ;;  %v946_v62 = vadd.f32 %v942_v56, %v2710_v15 }
 0x434   :  { %v915_v16 = vadd.f32 1.0, %v2325_v57  ;;  %v2327_v25 = vpop.eup %2326  ;;  %v947_v57 = vadd.f32 %v943_v7, %v2713_v20 }
 0x435   :  { %2330 = vrcp.f32 %v909_v59  ;;  %v2329_v33 = vpop.eup %2328  ;;  %v922_v24 = vadd.f32 1.0, %v2327_v25  ;;  %v945_v25 = vmul.f32 %v3104_v63, %v3102_v37 }
 0x436   :  { %2332 = vrcp.f32 %v915_v16 }
 0x437   :  { %2334 = vrcp.f32 %v922_v24 }
 0x43f   :  { %v2331_v6 = vpop.eup %2330 }
 0x440   :  { %v2333_v30 = vpop.eup %2332  ;;  %v926_v31 = vmul.f32 %v2331_v6, %v2329_v33 }
 0x441   :  { %v925_v47 = vmul.f32 %v2333_v30, %v2850_v51  ;;  %v2335_v26 = vpop.eup %2334 }
 0x443   :  { %v2902_v61 = vadd.f32 %v926_v31, %v925_v47 }
 0x445   :  { %2336 = vtanh.f32 %v2902_v61 }
 0x44f   :  { %v2337_v44 = vpop.eup %2336 }
 0x450   :  { %v929_v34 = vmul.f32 %v2337_v44, %v2335_v26  ;;  %v949_v26 = vadd.f32 %v945_v25, %v2720_v35  ;;  %v944_v44 = vmul.f32 %v3104_v63, %v2722_v43 }
 0x452   :  { %1015 = vmatmul.mubr.f32.vlgmr.msra.gmra.mrb[8].mxu0 %v929_v34  ;;  %1086 = vmatmul.mubr.f32.vlgmr.msra.gmra.mrb[8].mxu1 %v929_v34  ;;  %v930_v0 = vmul.f32 %v2735_v55, %v929_v34 }
 0x453   :  { %2062 = vmatpush1.bf16.msra.mxu0 %v2561_v10  ;;  %2094 = vmatpush1.bf16.msra.mxu1 %v2564_v14 }
 0x454   :  { %931 = vadd.xlane.f32.xlu1 %v930_v0  ;;  %2064 = vmatprep.subr.bf16.mxu0 %v2568_v18  ;;  %v948_v0 = vadd.f32 %v944_v44, %v2726_v60 }
 0x455   :  { %2096 = vmatprep.subr.bf16.mxu1 %v2570_v19  ;;  %1204 = vmatprep.mubr.f32.mxu0 %v3100_v48 }
 0x456   :  { %1275 = vmatprep.mubr.f32.mxu1 %v3100_v48 }
 0x457   :  { %2066 = vmatpush1.bf16.msra.mxu0 %v2573_v23  ;;  %2098 = vmatpush1.bf16.msra.mxu1 %v2577_v27 }
 0x458   :  { %2068 = vmatprep.subr.bf16.mxu0 %v2579_v28  ;;  %2100 = vmatprep.subr.bf16.mxu1 %v2581_v32 }
 0x45b   :  { %2070 = vmatpush1.bf16.msra.mxu0 %v2584_v36  ;;  %2102 = vmatpush1.bf16.msra.mxu1 %v2588_v40 }
 0x45c   :  { %2072 = vmatprep.subr.bf16.mxu0 %v2590_v41  ;;  %2104 = vmatprep.subr.bf16.mxu1 %v2593_v45 }
 0x45f   :  { %2074 = vmatpush1.bf16.msra.mxu0 %v2596_v52  ;;  %2106 = vmatpush1.bf16.msra.mxu1 %v2600_v53 }
 0x460   :  { %2076 = vmatprep.subr.bf16.mxu0 %v2602_v54  ;;  %2108 = vmatprep.subr.bf16.mxu1 %v2605_v58 }
 0x463   :  { %2078 = vmatpush1.bf16.msra.mxu0 %v2608_v1  ;;  %2110 = vmatpush1.bf16.msra.mxu1 %v2612_v2 }
 0x464   :  { %2080 = vmatprep.subr.bf16.mxu0 %v2614_v3  ;;  %2112 = vmatprep.subr.bf16.mxu1 %v2617_v8 }
 0x467   :  { %2082 = vmatpush1.bf16.msra.mxu0 %v2620_v17  ;;  %2114 = vmatpush1.bf16.msra.mxu1 %v2624_v21 }
 0x468   :  { %2084 = vmatprep.subr.bf16.mxu0 %v2626_v22  ;;  %2116 = vmatprep.subr.bf16.mxu1 %v2631_v29 }
 0x46b   :  { %2086 = vmatpush1.bf16.msra.mxu0 %v2635_v38  ;;  %2118 = vmatpush1.bf16.msra.mxu1 %v2640_v39 }
 0x46c   :  { %2088 = vmatprep.subr.bf16.mxu0 %v2642_v42  ;;  %2120 = vmatprep.subr.bf16.mxu1 %v2645_v46 }
 0x46f   :  { %2090 = vmatpush1.bf16.msra.mxu0 %v2648_v49  ;;  %2122 = vmatpush1.bf16.msra.mxu1 %v2652_v50 }
 0x470   :  { %2124 = vmatprep.subr.bf16.mxu0 %v2557_v5  ;;  %2156 = vmatprep.subr.bf16.mxu1 %v2559_v9 }
 0x4e1   :  { %v932_v51 = vpop.xlane.xlu1 %931 }
 0x4e2   :  { %v933_v12 = vadd.f32 %v932_v51, %v2784_v13 }
 0x4e4   :  { %935 = vst.msk [vmem:[#allocation10] sm:$0xff] %vm934_vm3, %v933_v12 }
 0x525   :  { %v1016_v59 = vpop.f32.mrb[8].mxu0  ;;  %v1087_v16 = vpop.f32.mrb[8].mxu1 }
 0x526   :  { %v1092_v33 = vadd.f32 %v1016_v59, %v946_v62  ;;  %v1018_v6 = vpop.f32.mrb[9].mxu0  ;;  %v1089_v30 = vpop.f32.mrb[9].mxu1  ;;  %v1094_v12 = vadd.f32 %v1087_v16, %v948_v0  ;;  %v3105_v0 = vld [vmem:[#allocation18_spill] sm:$0xff] }
 0x527   :  { %v1093_v31 = vadd.f32 %v1018_v6, %v947_v57  ;;  %v1095_v34 = vadd.f32 %v1089_v30, %v949_v26 }
 0x528   :  { %v1727_v24 = vmul.f32 -1.442695, %v1092_v33 }
 0x529   :  { %v1728_v47 = vmul.f32 -1.442695, %v1093_v31  ;;  %v1729_v51 = vmul.f32 -1.442695, %v1095_v34 }
 0x52a   :  { %2338 = vpow2.f32 %v1727_v24 }
 0x52b   :  { %2340 = vpow2.f32 %v1728_v47 }
 0x52c   :  { %2342 = vpow2.f32 %v1729_v51  ;;  %v1132_v51 = vmul.f32 %v3105_v0, %v2702_v4 }
 0x52d   :  { %2344 = vtanh.f32 %v1094_v12  ;;  %v1133_v12 = vmul.f32 %v3105_v0, %v2707_v11 }
 0x534   :  { %v2339_v56 = vpop.eup %2338 }
 0x535   :  { %v2341_v7 = vpop.eup %2340  ;;  %v1099_v62 = vadd.f32 1.0, %v2339_v56  ;;  %v1136_v56 = vadd.f32 %v1132_v51, %v2710_v15 }
 0x536   :  { %v1105_v57 = vadd.f32 1.0, %v2341_v7  ;;  %v2343_v59 = vpop.eup %2342  ;;  %v1137_v7 = vadd.f32 %v1133_v12, %v2713_v20 }
 0x537   :  { %2346 = vrcp.f32 %v1099_v62  ;;  %v2345_v25 = vpop.eup %2344  ;;  %v1112_v63 = vadd.f32 1.0, %v2343_v59 }
 0x538   :  { %2348 = vrcp.f32 %v1105_v57 }
 0x539   :  { %2350 = vrcp.f32 %v1112_v63 }
 0x541   :  { %v2347_v33 = vpop.eup %2346 }
 0x542   :  { %v2349_v6 = vpop.eup %2348  ;;  %v1116_v31 = vmul.f32 %v2347_v33, %v2345_v25 }
 0x543   :  { %v1115_v30 = vmul.f32 %v2349_v6, %v2902_v61  ;;  %v2351_v16 = vpop.eup %2350 }
 0x545   :  { %v2954_v24 = vadd.f32 %v1116_v31, %v1115_v30  ;;  %v1134_v30 = vmul.f32 %v3105_v0, %v2722_v43 }
 0x547   :  { %2352 = vtanh.f32 %v2954_v24 }
 0x551   :  { %v2353_v47 = vpop.eup %2352 }
 0x552   :  { %v1119_v26 = vmul.f32 %v2353_v47, %v2351_v16  ;;  %v1138_v47 = vadd.f32 %v1134_v30, %v2726_v60 }
 0x554   :  { %1205 = vmatmul.mubr.f32.vlgmr.msra.gmra.mrb[10].mxu0 %v1119_v26  ;;  %1276 = vmatmul.mubr.f32.vlgmr.msra.gmra.mrb[10].mxu1 %v1119_v26  ;;  %v1120_v44 = vmul.f32 %v2735_v55, %v1119_v26 }
 0x555   :  { %2126 = vmatpush1.bf16.msra.mxu0 %v2561_v10  ;;  %2158 = vmatpush1.bf16.msra.mxu1 %v2564_v14 }
 0x556   :  { %1121 = vadd.xlane.f32.xlu0 %v1120_v44  ;;  %2128 = vmatprep.subr.bf16.mxu0 %v2568_v18 }
 0x557   :  { %2160 = vmatprep.subr.bf16.mxu1 %v2570_v19  ;;  %1394 = vmatprep.mubr.f32.mxu0 %v3100_v48 }
 0x558   :  { %1465 = vmatprep.mubr.f32.mxu1 %v3100_v48 }
 0x559   :  { %2130 = vmatpush1.bf16.msra.mxu0 %v2573_v23  ;;  %2162 = vmatpush1.bf16.msra.mxu1 %v2577_v27 }
 0x55a   :  { %2132 = vmatprep.subr.bf16.mxu0 %v2579_v28  ;;  %2164 = vmatprep.subr.bf16.mxu1 %v2581_v32 }
 0x55d   :  { %2134 = vmatpush1.bf16.msra.mxu0 %v2584_v36  ;;  %2166 = vmatpush1.bf16.msra.mxu1 %v2588_v40 }
 0x55e   :  { %2136 = vmatprep.subr.bf16.mxu0 %v2590_v41  ;;  %2168 = vmatprep.subr.bf16.mxu1 %v2593_v45 }
 0x561   :  { %2138 = vmatpush1.bf16.msra.mxu0 %v2596_v52  ;;  %2170 = vmatpush1.bf16.msra.mxu1 %v2600_v53 }
 0x562   :  { %2140 = vmatprep.subr.bf16.mxu0 %v2602_v54  ;;  %2172 = vmatprep.subr.bf16.mxu1 %v2605_v58 }
 0x565   :  { %2142 = vmatpush1.bf16.msra.mxu0 %v2608_v1  ;;  %2174 = vmatpush1.bf16.msra.mxu1 %v2612_v2 }
 0x566   :  { %2144 = vmatprep.subr.bf16.mxu0 %v2614_v3  ;;  %2176 = vmatprep.subr.bf16.mxu1 %v2617_v8 }
 0x569   :  { %2146 = vmatpush1.bf16.msra.mxu0 %v2620_v17  ;;  %2178 = vmatpush1.bf16.msra.mxu1 %v2624_v21 }
 0x56a   :  { %2148 = vmatprep.subr.bf16.mxu0 %v2626_v22  ;;  %2180 = vmatprep.subr.bf16.mxu1 %v2631_v29 }
 0x56d   :  { %2150 = vmatpush1.bf16.msra.mxu0 %v2635_v38  ;;  %2182 = vmatpush1.bf16.msra.mxu1 %v2640_v39 }
 0x56e   :  { %2152 = vmatprep.subr.bf16.mxu0 %v2642_v42  ;;  %2184 = vmatprep.subr.bf16.mxu1 %v2645_v46 }
 0x571   :  { %2154 = vmatpush1.bf16.msra.mxu0 %v2648_v49  ;;  %2186 = vmatpush1.bf16.msra.mxu1 %v2652_v50 }
 0x572   :  { %2188 = vmatprep.subr.bf16.mxu0 %v2557_v5  ;;  %2220 = vmatprep.subr.bf16.mxu1 %v2559_v9  ;;  %v1135_v5 = vmul.f32 %v3105_v0, %v3102_v37 }
 0x574   :  { %v1139_v63 = vadd.f32 %v1135_v5, %v2720_v35 }
 0x5e3   :  { %v1122_v61 = vpop.xlane.xlu0 %1121 }
 0x5e4   :  { %v1123_v34 = vadd.f32 %v1122_v61, %v2784_v13 }
 0x5e6   :  { %1125 = vst.msk [vmem:[#allocation10] sm:$0xff] %vm1124_vm4, %v1123_v34 }
 0x627   :  { %v1206_v62 = vpop.f32.mrb[10].mxu0  ;;  %v1277_v57 = vpop.f32.mrb[10].mxu1 }
 0x628   :  { %v1282_v9 = vadd.f32 %v1206_v62, %v1136_v56  ;;  %v1208_v59 = vpop.f32.mrb[11].mxu0  ;;  %v1279_v25 = vpop.f32.mrb[11].mxu1  ;;  %v1284_v44 = vadd.f32 %v1277_v57, %v1138_v47 }
 0x629   :  { %v1283_v33 = vadd.f32 %v1208_v59, %v1137_v7  ;;  %v1285_v16 = vadd.f32 %v1279_v25, %v1139_v63 }
 0x62a   :  { %v1730_v6 = vmul.f32 -1.442695, %v1282_v9 }
 0x62b   :  { %v1731_v31 = vmul.f32 -1.442695, %v1283_v33  ;;  %v1732_v26 = vmul.f32 -1.442695, %v1285_v16 }
 0x62c   :  { %2354 = vpow2.f32 %v1730_v6 }
 0x62d   :  { %2356 = vpow2.f32 %v1731_v31 }
 0x62e   :  { %2358 = vpow2.f32 %v1732_v26 }
 0x62f   :  { %2360 = vtanh.f32 %v1284_v44 }
 0x636   :  { %v2355_v61 = vpop.eup %2354 }
 0x637   :  { %v2357_v34 = vpop.eup %2356  ;;  %v1289_v51 = vadd.f32 1.0, %v2355_v61  ;;  %v2402_v61 = vld [vmem:[%s3085_s4] ss:$0 sm:$0xff]  ;;  %s2488_s4 = smov [#allocation10]  }
 0x638   :  { %v1295_v12 = vadd.f32 1.0, %v2357_v34  ;;  %v2359_v56 = vpop.eup %2358  ;;  %s1704_s28 = sshll.u32 %s2488_s4, 4  ;;  %s1705_s28 = int_to_ptr.vmem [resolvable:$true] %s1704_s28 }
 0x639   :  { %2362 = vrcp.f32 %v1289_v51  ;;  %v2361_v7 = vpop.eup %2360  ;;  %v1302_v0 = vadd.f32 1.0, %v2359_v56  ;;  %s2447_s29 = scalar_lea.vmem %s1705_s28, 128  ;;  %p2452_p3 = scmp.lt.s32.totalorder %s1705_s28, %s1705_s28 }
 0x63a   :  { %2364 = vrcp.f32 %v1295_v12  ;;  %p2448_p2 = scmp.ne.s32.totalorder %s1705_s28, %s2447_s29  ;;  %p2453_p4 = scmp.lt.s32.totalorder %s2447_s29, %s2447_s29 }
 0x63b   :  { %2366 = vrcp.f32 %v1302_v0 }
 0x63c   :  { %p2454_p5 = por %p2453_p4, %p2452_p3 }
 0x63e   :  { %p2455_p6 = pnand %p2454_p5, %p2448_p2 }
 0x643   :  { %v2363_v62 = vpop.eup %2362 }
 0x644   :  { %v2365_v5 = vpop.eup %2364  ;;  %v1306_v9 = vmul.f32 %v2363_v62, %v2361_v7 }
 0x645   :  { %v1305_v59 = vmul.f32 %v2365_v5, %v2954_v24  ;;  %v2367_v57 = vpop.eup %2366 }
 0x647   :  { %v3006_v25 = vadd.f32 %v1306_v9, %v1305_v59 }
 0x649   :  { %2368 = vtanh.f32 %v3006_v25 }
 0x653   :  { %v2369_v33 = vpop.eup %2368 }
 0x654   :  { %v1309_v6 = vmul.f32 %v2369_v33, %v2367_v57 }
 0x656   :  { %1395 = vmatmul.mubr.f32.vlgmr.msra.gmra.mrb[12].mxu0 %v1309_v6  ;;  %1466 = vmatmul.mubr.f32.vlgmr.msra.gmra.mrb[12].mxu1 %v1309_v6  ;;  %v1310_v31 = vmul.f32 %v2735_v55, %v1309_v6 }
 0x657   :  { %2190 = vmatpush1.bf16.msra.mxu0 %v2561_v10  ;;  %2222 = vmatpush1.bf16.msra.mxu1 %v2564_v14  ;;  %v1506_v10 = vld [vmem:[#allocation5] sm:$0xff]  ;;  %v2487_v14 = vmov 7  }
 0x658   :  { %1311 = vadd.xlane.f32.xlu1 %v1310_v31  ;;  %2192 = vmatprep.subr.bf16.mxu0 %v2568_v18 }
 0x659   :  { %2224 = vmatprep.subr.bf16.mxu1 %v2570_v19  ;;  %1584 = vmatprep.mubr.f32.mxu0 %v3100_v48 }
 0x65a   :  { %1655 = vmatprep.mubr.f32.mxu1 %v3100_v48  ;;  %2272 = vset.pattern.permute.xlu1 %v2487_v14 }
 0x65b   :  { %2194 = vmatpush1.bf16.msra.mxu0 %v2573_v23  ;;  %2226 = vmatpush1.bf16.msra.mxu1 %v2577_v27  ;;  %v3106_v23 = vld [vmem:[#allocation17_spill] sm:$0xff] }
 0x65c   :  { %2196 = vmatprep.subr.bf16.mxu0 %v2579_v28  ;;  %2228 = vmatprep.subr.bf16.mxu1 %v2581_v32  ;;  %v1322_v27 = vmul.f32 %v3106_v23, %v2702_v4  ;;  %v1323_v28 = vmul.f32 %v3106_v23, %v2707_v11 }
 0x65d   :  { %2273 = vset.pattern.permute.xlu0 %v2487_v14 }
 0x65e   :  { %v1326_v32 = vadd.f32 %v1322_v27, %v2710_v15 }
 0x65f   :  { %2198 = vmatpush1.bf16.msra.mxu0 %v2584_v36  ;;  %2230 = vmatpush1.bf16.msra.mxu1 %v2588_v40  ;;  %v1327_v36 = vadd.f32 %v1323_v28, %v2713_v20 }
 0x660   :  { %2200 = vmatprep.subr.bf16.mxu0 %v2590_v41  ;;  %2232 = vmatprep.subr.bf16.mxu1 %v2593_v45  ;;  %v1325_v45 = vmul.f32 %v3106_v23, %v3102_v37 }
 0x663   :  { %2202 = vmatpush1.bf16.msra.mxu0 %v2596_v52  ;;  %2234 = vmatpush1.bf16.msra.mxu1 %v2600_v53 }
 0x664   :  { %2204 = vmatprep.subr.bf16.mxu0 %v2602_v54  ;;  %2236 = vmatprep.subr.bf16.mxu1 %v2605_v58 }
 0x667   :  { %2206 = vmatpush1.bf16.msra.mxu0 %v2608_v1  ;;  %2238 = vmatpush1.bf16.msra.mxu1 %v2612_v2 }
 0x668   :  { %2208 = vmatprep.subr.bf16.mxu0 %v2614_v3  ;;  %2240 = vmatprep.subr.bf16.mxu1 %v2617_v8  ;;  %v1329_v3 = vadd.f32 %v1325_v45, %v2720_v35  ;;  %v1324_v8 = vmul.f32 %v3106_v23, %v2722_v43 }
 0x669   :  { %1509 = vperm.xlu1 %2272, %v1506_v10  }
 0x66b   :  { %2210 = vmatpush1.bf16.msra.mxu0 %v2620_v17  ;;  %2242 = vmatpush1.bf16.msra.mxu1 %v2624_v21  ;;  %v1328_v21 = vadd.f32 %v1324_v8, %v2726_v60 }
 0x66c   :  { %2212 = vmatprep.subr.bf16.mxu0 %v2626_v22  ;;  %2244 = vmatprep.subr.bf16.mxu1 %v2631_v29 }
 0x66f   :  { %2214 = vmatpush1.bf16.msra.mxu0 %v2635_v38  ;;  %2246 = vmatpush1.bf16.msra.mxu1 %v2640_v39 }
 0x670   :  { %2216 = vmatprep.subr.bf16.mxu0 %v2642_v42  ;;  %2248 = vmatprep.subr.bf16.mxu1 %v2645_v46 }
 0x673   :  { %2218 = vmatpush1.bf16.msra.mxu0 %v2648_v49  ;;  %2250 = vmatpush1.bf16.msra.mxu1 %v2652_v50 }
 0x6e5   :  { %v1312_v18 = vpop.xlane.xlu1 %1311 }
 0x6e6   :  { %v1313_v19 = vadd.f32 %v1312_v18, %v2784_v13 }
 0x6e8   :  { %1315 = vst.msk [vmem:[#allocation10] sm:$0xff] %vm1314_vm5, %v1313_v19 }
 0x6e9   :  { %v1510_v56 = vpop.permute.xlu1 %1509 }
 0x6ea   :  { %v1512_v7 = vmul.f32 %v1510_v56, %v2702_v4  ;;  %v1513_v62 = vmul.f32 %v1510_v56, %v2707_v11  ;;  %v1515_v0 = vmul.f32 %v1510_v56, %v3102_v37  ;;  %v1514_v4 = vmul.f32 %v1510_v56, %v2722_v43 }
 0x6ec   :  { %v1516_v5 = vadd.f32 %v1512_v7, %v2710_v15  ;;  %v1517_v9 = vadd.f32 %v1513_v62, %v2713_v20  ;;  %v1519_v18 = vadd.f32 %v1515_v0, %v2720_v35  ;;  %v1518_v15 = vadd.f32 %v1514_v4, %v2726_v60 }
 0x729   :  { %v1396_v40 = vpop.f32.mrb[12].mxu0  ;;  %v1467_v41 = vpop.f32.mrb[12].mxu1 }
 0x72a   :  { %v1472_v52 = vadd.f32 %v1396_v40, %v1326_v32  ;;  %v1398_v53 = vpop.f32.mrb[13].mxu0  ;;  %v1469_v54 = vpop.f32.mrb[13].mxu1  ;;  %v1474_v29 = vadd.f32 %v1467_v41, %v1328_v21 }
 0x72b   :  { %v1473_v58 = vadd.f32 %v1398_v53, %v1327_v36  ;;  %v1475_v17 = vadd.f32 %v1469_v54, %v1329_v3 }
 0x72c   :  { %v1733_v1 = vmul.f32 -1.442695, %v1472_v52 }
 0x72d   :  { %v1734_v2 = vmul.f32 -1.442695, %v1473_v58  ;;  %v1735_v22 = vmul.f32 -1.442695, %v1475_v17 }
 0x72e   :  { %2370 = vpow2.f32 %v1733_v1 }
 0x72f   :  { %2372 = vpow2.f32 %v1734_v2 }
 0x730   :  { %2374 = vpow2.f32 %v1735_v22 }
 0x731   :  { %2376 = vtanh.f32 %v1474_v29 }
 0x738   :  { %v2371_v38 = vpop.eup %2370 }
 0x739   :  { %v2373_v39 = vpop.eup %2372  ;;  %v1479_v42 = vadd.f32 1.0, %v2371_v38 }
 0x73a   :  { %v1485_v46 = vadd.f32 1.0, %v2373_v39  ;;  %v2375_v49 = vpop.eup %2374 }
 0x73b   :  { %2378 = vrcp.f32 %v1479_v42  ;;  %v2377_v50 = vpop.eup %2376  ;;  %v1492_v63 = vadd.f32 1.0, %v2375_v49 }
 0x73c   :  { %2380 = vrcp.f32 %v1485_v46 }
 0x73d   :  { %2382 = vrcp.f32 %v1492_v63 }
 0x745   :  { %v2379_v55 = vpop.eup %2378 }
 0x746   :  { %v2381_v48 = vpop.eup %2380  ;;  %v1496_v24 = vmul.f32 %v2379_v55, %v2377_v50 }
 0x747   :  { %v1495_v30 = vmul.f32 %v2381_v48, %v3006_v25  ;;  %v2383_v47 = vpop.eup %2382 }
 0x749   :  { %v1497_v16 = vadd.f32 %v1496_v24, %v1495_v30 }
 0x74b   :  { %2384 = vtanh.f32 %v1497_v16 }
 0x755   :  { %v2385_v26 = vpop.eup %2384 }
 0x756   :  { %v1499_v44 = vmul.f32 %v2385_v26, %v2383_v47 }
 0x758   :  { %1585 = vmatmul.mubr.f32.vlgmr.msra.gmra.mrb[14].mxu0 %v1499_v44  ;;  %1656 = vmatmul.mubr.f32.vlgmr.msra.gmra.mrb[14].mxu1 %v1499_v44  ;;  %v1500_v34 = vmul.f32 %v2402_v61, %v1499_v44 }
 0x75a   :  { %1501 = vadd.xlane.f32.xlu0 %v1500_v34 }
 0x7e7   :  { %v1502_v51 = vpop.xlane.xlu0 %1501 }
 0x7e8   :  { %v1503_v12 = vadd.f32 %v1502_v51, %v2784_v13 }
 0x7ea   :  { %1505 = vst.msk [vmem:[#allocation10] sm:$0xff] %vm1504_vm6, %v1503_v12 }
 0x82b   :  { %v1586_v59 = vpop.f32.mrb[14].mxu0  ;;  %v1657_v25 = vpop.f32.mrb[14].mxu1 }
 0x82c   :  { %v1662_v57 = vadd.f32 %v1586_v59, %v1516_v5  ;;  %v1588_v33 = vpop.f32.mrb[15].mxu0  ;;  %v1659_v6 = vpop.f32.mrb[15].mxu1  ;;  %v1664_v19 = vadd.f32 %v1657_v25, %v1518_v15 }
 0x82d   :  { %v1663_v31 = vadd.f32 %v1588_v33, %v1517_v9  ;;  %v1665_v11 = vadd.f32 %v1659_v6, %v1519_v18 }
 0x82e   :  { %v1736_v10 = vmul.f32 -1.442695, %v1662_v57 }
 0x82f   :  { %v1737_v14 = vmul.f32 -1.442695, %v1663_v31  ;;  %v1738_v20 = vmul.f32 -1.442695, %v1665_v11 }
 0x830   :  { %2386 = vpow2.f32 %v1736_v10 }
 0x831   :  { %2388 = vpow2.f32 %v1737_v14 }
 0x832   :  { %2390 = vpow2.f32 %v1738_v20 }
 0x833   :  { %2392 = vtanh.f32 %v1664_v19 }
 0x83a   :  { %v2387_v37 = vpop.eup %2386 }
 0x83b   :  { %v2389_v23 = vpop.eup %2388  ;;  %v1669_v27 = vadd.f32 1.0, %v2387_v37 }
 0x83c   :  { %v1675_v28 = vadd.f32 1.0, %v2389_v23  ;;  %v2391_v32 = vpop.eup %2390 }
 0x83d   :  { %2394 = vrcp.f32 %v1669_v27  ;;  %v2393_v36 = vpop.eup %2392  ;;  %v1682_v41 = vadd.f32 1.0, %v2391_v32 }
 0x83e   :  { %2396 = vrcp.f32 %v1675_v28 }
 0x83f   :  { %2398 = vrcp.f32 %v1682_v41 }
 0x847   :  { %v2395_v35 = vpop.eup %2394 }
 0x848   :  { %v2397_v40 = vpop.eup %2396  ;;  %v1686_v43 = vmul.f32 %v2395_v35, %v2393_v36 }
 0x849   :  { %v1685_v45 = vmul.f32 %v2397_v40, %v1497_v16  ;;  %v2399_v60 = vpop.eup %2398 }
 0x84b   :  { %v1687_v52 = vadd.f32 %v1686_v43, %v1685_v45 }
 0x84d   :  { %2400 = vtanh.f32 %v1687_v52 }
 0x857   :  { %v2401_v53 = vpop.eup %2400 }
 0x858   :  { %v1689_v54 = vmul.f32 %v2401_v53, %v2399_v60 }
 0x85a   :  { %v1690_v58 = vmul.f32 %v2402_v61, %v1689_v54 }
 0x85c   :  { %1691 = vadd.xlane.f32.xlu0 %v1690_v58 }
 0x8e9   :  { %v1692_v1 = vpop.xlane.xlu0 %1691 }
 0x8ea   :  { %v1693_v2 = vadd.f32 %v1692_v1, %v2784_v13 }
 0x8ec   :  { %1695 = vst.msk [vmem:[#allocation10] sm:$0xff] %vm1694_vm7, %v1693_v2 }
 0x8ed   :  { %2458 = shalt.err (!%p2455_p6)
}
 0x8ee   :  { %s2459_s8 = scalar_lea.hbm %s3087_s6, 128 }
 0x8ef   :  { %p2460_p7 = scmp.ne.s32.totalorder %s3087_s6, %s2459_s8  ;;  %p2463_p8 = scmp.lt.u32.totalorder %s2459_s8, %s3087_s6 }
 0x8f1   :  { %p2465_p9 = pnand %p2463_p8, %p2460_p7 }
 0x8f3   :  { %2468 = shalt.err (!%p2465_p9)
}
 0x8f4   :  { %1707 = dma.vmem_to_hbm [thread:$0]  %s1705_s28, 128, %s3087_s6, [#allocation7]  }
 0x8f5   :  { %2473 = dma.done.wait [#allocation7], 128  }
 0x8f6   :  { %2474 = vsyncadd [#allocation7], 4294967168 }
 0x8f7   :  { %1711 = vsyncpa [#allocation6], 1 }
 0x8f8   :  { %1712 = vsyncpa [#allocation9], 1 }
 0x8f9   :  { %1713 = vsyncpa [#allocation7], 1 }

</bundles_post_ra>
